<compile_context>
chip_gen: v7x
topology: tpu7x:2x2x1
jax: 0.10.0
libtpu: 0.0.40
codegen_flags: <defaults>
</compile_context>

<pallas_src>
import math
import numpy as np
import jax
import jax.numpy as jnp
from jax import lax
from jax.experimental import pallas as pl
from jax.experimental.pallas import tpu as pltpu


# --------------------------------------------------------------------------
# Pallas kernel: one invocation processes the whole batch.
# --------------------------------------------------------------------------
def _make_block_disc_kernel(cpad, cout, s_pad, m_out, wp, taps, pool_chunks,
                            row_w1, row_w2, row_mask, row_base, col_bias):
    """Build the kernel closure over the static geometry.

    taps[k] = (kh-1)*Wp + (kw-1): flat source offset of 3x3 tap k in the
    zero-padded, flattened (per-image row-major) spatial layout.
    """
    nw1 = cout + cpad        # combined shortcut(8) + conv1(8, zero-padded) rows
    k1 = 10 * cpad           # patch rows: 9 aligned tap slots + raw-x slot = 80
    chunk = 128              # lane-chunk width of the pooling gather

    def kernel(x_ref, c_ref, o_ref, patch_ref):
        # ---- unpack the single packed-constant input (static ref slices) ----
        w1c = c_ref[row_w1:row_w1 + nw1, 0:k1]                      # (16, 80)
        b1c = c_ref[row_w1:row_w1 + nw1, col_bias:col_bias + 1]     # (16, 1)
        w2c = c_ref[row_w2:row_w2 + cout, 0:k1]                     # (8, 80)
        b2c = c_ref[row_w2:row_w2 + cout, col_bias:col_bias + 1]    # (8, 1)
        mask = c_ref[row_mask:row_mask + 1, :]                      # (1, s_pad)
        base = c_ref[row_base:row_base + 1, 0:m_out].astype(jnp.int32)  # (1, 128)

        x = x_ref[...]                         # (8, s_pad); rows Cin..7 are zero
        a = jnp.maximum(x, 0.0)                # relu(x); zero padding preserved

        # ---- conv1 (+ fused 1x1 shortcut): im2col via 9 aligned (8,s_pad) slabs
        for k, d in enumerate(taps):
            slab = a if d == 0 else pltpu.roll(a, (-d) % s_pad, axis=1)
            patch_ref[k * cpad:(k + 1) * cpad, :] = slab     # full-tile dense store
        patch_ref[9 * cpad:10 * cpad, :] = x                 # raw x for the shortcut

        hs = jnp.dot(w1c, patch_ref[...],
                     preferred_element_type=jnp.float32) + b1c      # (16, s_pad)
        sc = hs[0:cout, :]                                          # shortcut pre-pool
        # relu + re-zero padding ring / lane tail (emulates conv2 zero padding).
        # INVARIANT: this mask multiply must stay BEFORE conv2's rolls.
        h = jnp.maximum(hs[cout:cout + cpad, :], 0.0) * mask        # (8, s_pad)

        # ---- conv2: reuse the SAME scratch; rows 72..79 still hold x but w2c
        #      is identically zero over those columns, so they contribute 0.
        for k, d in enumerate(taps):
            slab = h if d == 0 else pltpu.roll(h, (-d) % s_pad, axis=1)
            patch_ref[k * cpad:(k + 1) * cpad, :] = slab
        r = jnp.dot(w2c, patch_ref[...],
                    preferred_element_type=jnp.float32) + b2c       # (8, s_pad)

        # ---- shortcut + residual, then 2x2 / stride-2 average pool ----
        y = sc + r
        # window sum via 3 lane rolls (XLU), then gather the top-left lane of
        # each 2x2 window with an in-kernel one-hot selection (iota == base),
        # one 128-lane chunk at a time (only chunks that contain windows).
        ysum = (y
                + pltpu.roll(y, s_pad - 1, axis=1)
                + pltpu.roll(y, s_pad - wp, axis=1)
                + pltpu.roll(y, s_pad - wp - 1, axis=1))
        rid = lax.broadcasted_iota(jnp.int32, (chunk, m_out), 0)    # hoisted
        acc = jnp.zeros((cout, m_out), jnp.float32)
        for blk in pool_chunks:
            sel = jnp.where(rid == (base - blk * chunk), 0.25, 0.0)
            acc = acc + jnp.dot(ysum[:, blk * chunk:(blk + 1) * chunk], sel,
                                preferred_element_type=jnp.float32)
        o_ref[...] = acc                                            # one dense vreg

    return kernel


# --------------------------------------------------------------------------
# Wrapper: parameter / constant prep (glue) + pallas_call
# --------------------------------------------------------------------------
def block_discriminator_pallas(x_nchw, params, downsample=True):
    """Forward of BlockDiscriminator with a Pallas TPU kernel.  x is NCHW f32."""
    assert downsample, "this build exercises the downsample=True path"
    w1, b1, w2, b2, wsc, bsc = params
    N, Cin, H, W = x_nchw.shape
    h_ch = w1.shape[0]
    Cout = w2.shape[0]
    assert H % 2 == 0 and W % 2 == 0
    Cpad = 8
    assert Cin <= Cpad and h_ch <= Cpad and Cout == Cpad, "geometry of this build"
    Hp, Wp = H + 2, W + 2
    Ho, Wo = H // 2, W // 2
    s_img = Hp * Wp
    s = N * s_img
    s_pad = ((s + 127) // 128) * 128          # lane axis padded to a 128-multiple
    m_out = N * Ho * Wo                       # pooled flat output width (=128 here)
    assert s_pad % 128 == 0 and m_out % 128 == 0

    # 3x3 tap offsets in the flat padded layout
    taps = tuple((kh - 1) * Wp + (kw - 1) for kh in range(3) for kw in range(3))

    # ---- packed-constant row/col layout ----
    ROW_W1 = 0                      # 16 rows: shortcut(8) + conv1(8, zero-padded)
    ROW_W2 = Cout + Cpad            # 8 rows: conv2
    ROW_MASK = ROW_W2 + Cout        # 1 row : interior mask
    ROW_BASE = ROW_MASK + 1         # 1 row : pool window top-left flat index
    N_ROWS = ROW_BASE + 1           # 26
    K1 = 10 * Cpad                  # 80 (9 aligned tap slots + raw-x slot)
    COL_BIAS = K1                   # bias column (80)

    # interior mask + top-left pool-window index per output column (trace time)
    mask_np = np.zeros((s_pad,), np.float32)
    base_np = np.zeros((m_out,), np.float32)
    for n in range(N):
        for i in range(H):
            for j in range(W):
                mask_np[n * s_img + (i + 1) * Wp + (j + 1)] = 1.0
        for io in range(Ho):
            for jo in range(Wo):
                base_np[(n * Ho + io) * Wo + jo] = (
                    n * s_img + (2 * io + 1) * Wp + (2 * jo + 1))
    pool_chunks = tuple(sorted({int(b) // 128 for b in base_np}))

    # tap-concatenated weights with channel slots padded to 8 sublanes
    # (column index = k*8 + c, k = kh*3 + kw)
    w1cols = jnp.pad(jnp.transpose(w1, (0, 2, 3, 1)).reshape(h_ch, 9, Cin),
                     ((0, 0), (0, 0), (0, Cpad - Cin))).reshape(h_ch, 9 * Cpad)
    w2cols = jnp.pad(jnp.transpose(w2, (0, 2, 3, 1)).reshape(Cout, 9, h_ch),
                     ((0, 0), (0, 0), (0, Cpad - h_ch))).reshape(Cout, 9 * Cpad)

    const = jnp.zeros((N_ROWS, s_pad), jnp.float32)
    # combined conv1 + shortcut weight block (rows 0..7 shortcut, 8..11 conv1)
    const = const.at[ROW_W1:ROW_W1 + Cout,
                     9 * Cpad:9 * Cpad + Cin].set(wsc[:, :, 0, 0])
    const = const.at[ROW_W1:ROW_W1 + Cout, COL_BIAS].set(bsc)
    const = const.at[ROW_W1 + Cout:ROW_W1 + Cout + h_ch, 0:9 * Cpad].set(w1cols)
    const = const.at[ROW_W1 + Cout:ROW_W1 + Cout + h_ch, COL_BIAS].set(b1)
    # conv2 weight block (cols 72..79 stay zero: they face the raw-x scratch rows)
    const = const.at[ROW_W2:ROW_W2 + Cout, 0:9 * Cpad].set(w2cols)
    const = const.at[ROW_W2:ROW_W2 + Cout, COL_BIAS].set(b2)
    # interior mask + pool base indices
    const = const.at[ROW_MASK, :].set(jnp.asarray(mask_np))
    const = const.at[ROW_BASE, 0:m_out].set(jnp.asarray(base_np))

    # ---- x: NCHW -> channels (padded to 8 sublanes), flat zero-padded spatial on lanes
    xp = jnp.pad(x_nchw, ((0, 0), (0, 0), (1, 1), (1, 1)))       # (N,Cin,Hp,Wp)
    xf = jnp.transpose(xp, (1, 0, 2, 3)).reshape(Cin, s)         # (Cin, N*Hp*Wp)
    xf = jnp.pad(xf, ((0, Cpad - Cin), (0, s_pad - s)))          # (8, s_pad)

    kernel = _make_block_disc_kernel(Cpad, Cout, s_pad, m_out, Wp, taps,
                                     pool_chunks, ROW_W1, ROW_W2, ROW_MASK,
                                     ROW_BASE, COL_BIAS)

    # NOTE: at this tiny size a single grid step keeps the output a dense
    # 128-lane vreg; for large N*H*W (esp. on v7x / 64 MiB VMEM) split the lane
    # axis into a ("parallel",) grid with a +/-(Wp+1) halo instead.
    out = pl.pallas_call(
        kernel,
        out_shape=jax.ShapeDtypeStruct((Cout, m_out), jnp.float32),
        grid_spec=pltpu.PrefetchScalarGridSpec(
            num_scalar_prefetch=0,
            grid=(1,),                                           # whole batch, one step
            in_specs=[
                pl.BlockSpec((Cpad, s_pad), lambda i: (0, 0)),       # x (24 KiB)
                pl.BlockSpec((N_ROWS, s_pad), lambda i: (0, 0)),     # packed constants
            ],
            out_specs=pl.BlockSpec((Cout, m_out), lambda i: (0, 0)),
            scratch_shapes=[
                pltpu.VMEM((K1, s_pad), jnp.float32),   # ONE reused im2col buffer
            ],
        ),
        compiler_params=pltpu.CompilerParams(
            dimension_semantics=("arbitrary",)),
    )(xf, const)

    # (Cout, N*Ho*Wo) -> NCHW
    return jnp.transpose(out.reshape(Cout, N, Ho, Wo), (1, 0, 2, 3))


# --------------------------------------------------------------------------
# Synthetic init matching the PyTorch module (xavier + conv bias + spectral norm)
# --------------------------------------------------------------------------
def xavier_uniform(key, shape, gain):
    # shape = (out_ch, in_ch, kh, kw)
    fan_out = shape[0] * shape[2] * shape[3]
    fan_in = shape[1] * shape[2] * shape[3]
    a = gain * math.sqrt(6.0 / (fan_in + fan_out))
    return jax.random.uniform(key, shape, jnp.float32, -a, a)


def conv_bias(key, out_ch, fan_in):
    bound = 1.0 / math.sqrt(fan_in)
    return jax.random.uniform(key, (out_ch,), jnp.float32, -bound, bound)


def spectral_normalize(w, key, n_iter=1, eps=1e-12):
    """PyTorch-style spectral_norm: divide weight by its top singular value."""
    w_mat = w.reshape(w.shape[0], -1)
    u = jax.random.normal(key, (w_mat.shape[0],), jnp.float32)
    u = u / (jnp.linalg.norm(u) + eps)
    v = None
    for _ in range(n_iter):
        v = w_mat.T @ u
        v = v / (jnp.linalg.norm(v) + eps)
        u = w_mat @ v
        u = u / (jnp.linalg.norm(u) + eps)
    sigma = u @ (w_mat @ v)
    return w / sigma


# --------------------------------------------------------------------------
# Pure-JAX reference (mirrors the PyTorch forward exactly) for validation.
# --------------------------------------------------------------------------
def _conv2d_ref(x, w, b, pad):
    y = jax.lax.conv_general_dilated(
        x, w, window_strides=(1, 1), padding=[(pad, pad), (pad, pad)],
        dimension_numbers=("NCHW", "OIHW", "NCHW"),
        precision=jax.lax.Precision.HIGHEST)
    return y + b[None, :, None, None]


def _avg_pool2x2_ref(x):
    s = jax.lax.reduce_window(x, 0.0, jax.lax.add, (1, 1, 2, 2), (1, 1, 2, 2),
                              "VALID")
    return s / 4.0


def block_discriminator_ref(x, params):
    w1, b1, w2, b2, wsc, bsc = params
    relu = jax.nn.relu
    sc = _avg_pool2x2_ref(_conv2d_ref(x, wsc, bsc, pad=0))
    h = _conv2d_ref(relu(x), w1, b1, pad=1)
    h = _conv2d_ref(relu(h), w2, b2, pad=1)
    h = _avg_pool2x2_ref(h)
    return sc + h


# --------------------------------------------------------------------------
if __name__ == "__main__":
    # BlockDiscriminator(in_ch=4, out_ch=8, downsample=True): h_ch = in_ch = 4
    in_ch, out_ch, h_ch = 4, 8, 4
    N, H, W = 2, 16, 16

    key = jax.random.PRNGKey(0)
    kx, kw1, kw2, kwsc, kb1, kb2, kbsc, ku1, ku2, kusc = jax.random.split(key, 10)

    x = jax.random.normal(kx, (N, in_ch, H, W), jnp.float32)

    # deterministic synthetic init matching the module's __init__ shapes/inits
    w1_raw = xavier_uniform(kw1, (h_ch, in_ch, 3, 3), math.sqrt(2.0))
    w2_raw = xavier_uniform(kw2, (out_ch, h_ch, 3, 3), math.sqrt(2.0))
    wsc_raw = xavier_uniform(kwsc, (out_ch, in_ch, 1, 1), 1.0)
    b1 = conv_bias(kb1, h_ch, in_ch * 9)
    b2 = conv_bias(kb2, out_ch, h_ch * 9)
    bsc = conv_bias(kbsc, out_ch, in_ch * 1)

    # spectral_norm on the conv weights (one power iteration, like PyTorch)
    w1 = spectral_normalize(w1_raw, ku1)
    w2 = spectral_normalize(w2_raw, ku2)
    wsc = spectral_normalize(wsc_raw, kusc)

    params = (w1, b1, w2, b2, wsc, bsc)

    out = block_discriminator_pallas(x, params, downsample=True)
    out = jax.block_until_ready(out)

    ref = jax.block_until_ready(block_discriminator_ref(x, params))

    err = float(jnp.max(jnp.abs(out - ref)))
    scale = float(jnp.max(jnp.abs(ref)))
    assert out.shape == (N, out_ch, H // 2, W // 2), out.shape
    assert err <= 1e-2 * max(scale, 1.0), f"mismatch: max|diff|={err}, scale={scale}"

    print("KERNEL_OK")
</pallas_src>

<mosaic_0001>
module attributes {stable_mosaic.version = 11 : i64} {
  func.func @kernel(%arg0: i32, %arg1: memref<8x768xf32, #tpu.memory_space<vmem>>, %arg2: memref<26x768xf32, #tpu.memory_space<vmem>>, %arg3: memref<8x128xf32, #tpu.memory_space<vmem>>, %arg4: memref<80x768xf32, #tpu.memory_space<vmem>>) attributes {dimension_semantics = [#tpu.dimension_semantics<arbitrary>], iteration_bounds = array<i64: 1>, scalar_prefetch = 0 : i64, scratch_operands = 1 : i64, tpu.core_type = #tpu.core_type<tc>, window_params = [{pipeline_mode = #tpu.pipeline_mode<synchronous>, transform_indices = @transform_0, window_bounds = array<i64: 8, 768>}, {pipeline_mode = #tpu.pipeline_mode<synchronous>, transform_indices = @transform_1, window_bounds = array<i64: 26, 768>}, {pipeline_mode = #tpu.pipeline_mode<synchronous>, transform_indices = @transform_2, window_bounds = array<i64: 8, 128>}]} {
    %c0 = arith.constant 0 : index
    %c0_0 = arith.constant 0 : index
    %0 = vector.load %arg2[%c0, %c0_0] : memref<26x768xf32, #tpu.memory_space<vmem>>, vector<16x80xf32>
    %c0_1 = arith.constant 0 : index
    %c80 = arith.constant 80 : index
    %1 = vector.load %arg2[%c0_1, %c80] : memref<26x768xf32, #tpu.memory_space<vmem>>, vector<16x1xf32>
    %c16 = arith.constant 16 : index
    %c0_2 = arith.constant 0 : index
    %2 = vector.load %arg2[%c16, %c0_2] : memref<26x768xf32, #tpu.memory_space<vmem>>, vector<8x80xf32>
    %c16_3 = arith.constant 16 : index
    %c80_4 = arith.constant 80 : index
    %3 = vector.load %arg2[%c16_3, %c80_4] : memref<26x768xf32, #tpu.memory_space<vmem>>, vector<8x1xf32>
    %c24 = arith.constant 24 : index
    %c0_5 = arith.constant 0 : index
    %4 = vector.load %arg2[%c24, %c0_5] : memref<26x768xf32, #tpu.memory_space<vmem>>, vector<1x768xf32>
    %c25 = arith.constant 25 : index
    %c0_6 = arith.constant 0 : index
    %5 = vector.load %arg2[%c25, %c0_6] : memref<26x768xf32, #tpu.memory_space<vmem>>, vector<1x128xf32>
    %6 = arith.fptosi %5 : vector<1x128xf32> to vector<1x128xi32>
    %c0_7 = arith.constant 0 : index
    %c0_8 = arith.constant 0 : index
    %7 = vector.load %arg1[%c0_7, %c0_8] : memref<8x768xf32, #tpu.memory_space<vmem>>, vector<8x768xf32>
    %cst = arith.constant 0.000000e+00 : f32
    %8 = vector.broadcast %cst : f32 to vector<8x768xf32>
    %9 = arith.maximumf %7, %8 : vector<8x768xf32>
    %c19_i32 = arith.constant 19 : i32
    %10 = tpu.dynamic_rotate %9 by %c19_i32 dim 1 : vector<8x768xf32>, i32 -> vector<8x768xf32>
    %c0_9 = arith.constant 0 : index
    %c0_10 = arith.constant 0 : index
    %11 = vector.load %arg4[%c0_9, %c0_10] : memref<80x768xf32, #tpu.memory_space<vmem>>, vector<8x768xf32>
    tpu.vector_store %arg4[%c0_9, %c0_10], %10 {strides = array<i32>} : memref<80x768xf32, #tpu.memory_space<vmem>>, vector<8x768xf32>,
    %c18_i32 = arith.constant 18 : i32
    %12 = tpu.dynamic_rotate %9 by %c18_i32 dim 1 : vector<8x768xf32>, i32 -> vector<8x768xf32>
    %c8 = arith.constant 8 : index
    %c0_11 = arith.constant 0 : index
    %13 = vector.load %arg4[%c8, %c0_11] : memref<80x768xf32, #tpu.memory_space<vmem>>, vector<8x768xf32>
    tpu.vector_store %arg4[%c8, %c0_11], %12 {strides = array<i32>} : memref<80x768xf32, #tpu.memory_space<vmem>>, vector<8x768xf32>,
    %c17_i32 = arith.constant 17 : i32
    %14 = tpu.dynamic_rotate %9 by %c17_i32 dim 1 : vector<8x768xf32>, i32 -> vector<8x768xf32>
    %c16_12 = arith.constant 16 : index
    %c0_13 = arith.constant 0 : index
    %15 = vector.load %arg4[%c16_12, %c0_13] : memref<80x768xf32, #tpu.memory_space<vmem>>, vector<8x768xf32>
    tpu.vector_store %arg4[%c16_12, %c0_13], %14 {strides = array<i32>} : memref<80x768xf32, #tpu.memory_space<vmem>>, vector<8x768xf32>,
    %c1_i32 = arith.constant 1 : i32
    %16 = tpu.dynamic_rotate %9 by %c1_i32 dim 1 : vector<8x768xf32>, i32 -> vector<8x768xf32>
    %c24_14 = arith.constant 24 : index
    %c0_15 = arith.constant 0 : index
    %17 = vector.load %arg4[%c24_14, %c0_15] : memref<80x768xf32, #tpu.memory_space<vmem>>, vector<8x768xf32>
    tpu.vector_store %arg4[%c24_14, %c0_15], %16 {strides = array<i32>} : memref<80x768xf32, #tpu.memory_space<vmem>>, vector<8x768xf32>,
    %c32 = arith.constant 32 : index
    %c0_16 = arith.constant 0 : index
    %18 = vector.load %arg4[%c32, %c0_16] : memref<80x768xf32, #tpu.memory_space<vmem>>, vector<8x768xf32>
    tpu.vector_store %arg4[%c32, %c0_16], %9 {strides = array<i32>} : memref<80x768xf32, #tpu.memory_space<vmem>>, vector<8x768xf32>,
    %c767_i32 = arith.constant 767 : i32
    %19 = tpu.dynamic_rotate %9 by %c767_i32 dim 1 : vector<8x768xf32>, i32 -> vector<8x768xf32>
    %c40 = arith.constant 40 : index
    %c0_17 = arith.constant 0 : index
    %20 = vector.load %arg4[%c40, %c0_17] : memref<80x768xf32, #tpu.memory_space<vmem>>, vector<8x768xf32>
    tpu.vector_store %arg4[%c40, %c0_17], %19 {strides = array<i32>} : memref<80x768xf32, #tpu.memory_space<vmem>>, vector<8x768xf32>,
    %c751_i32 = arith.constant 751 : i32
    %21 = tpu.dynamic_rotate %9 by %c751_i32 dim 1 : vector<8x768xf32>, i32 -> vector<8x768xf32>
    %c48 = arith.constant 48 : index
    %c0_18 = arith.constant 0 : index
    %22 = vector.load %arg4[%c48, %c0_18] : memref<80x768xf32, #tpu.memory_space<vmem>>, vector<8x768xf32>
    tpu.vector_store %arg4[%c48, %c0_18], %21 {strides = array<i32>} : memref<80x768xf32, #tpu.memory_space<vmem>>, vector<8x768xf32>,
    %c750_i32 = arith.constant 750 : i32
    %23 = tpu.dynamic_rotate %9 by %c750_i32 dim 1 : vector<8x768xf32>, i32 -> vector<8x768xf32>
    %c56 = arith.constant 56 : index
    %c0_19 = arith.constant 0 : index
    %24 = vector.load %arg4[%c56, %c0_19] : memref<80x768xf32, #tpu.memory_space<vmem>>, vector<8x768xf32>
    tpu.vector_store %arg4[%c56, %c0_19], %23 {strides = array<i32>} : memref<80x768xf32, #tpu.memory_space<vmem>>, vector<8x768xf32>,
    %c749_i32 = arith.constant 749 : i32
    %25 = tpu.dynamic_rotate %9 by %c749_i32 dim 1 : vector<8x768xf32>, i32 -> vector<8x768xf32>
    %c64 = arith.constant 64 : index
    %c0_20 = arith.constant 0 : index
    %26 = vector.load %arg4[%c64, %c0_20] : memref<80x768xf32, #tpu.memory_space<vmem>>, vector<8x768xf32>
    tpu.vector_store %arg4[%c64, %c0_20], %25 {strides = array<i32>} : memref<80x768xf32, #tpu.memory_space<vmem>>, vector<8x768xf32>,
    %c72 = arith.constant 72 : index
    %c0_21 = arith.constant 0 : index
    %27 = vector.load %arg4[%c72, %c0_21] : memref<80x768xf32, #tpu.memory_space<vmem>>, vector<8x768xf32>
    tpu.vector_store %arg4[%c72, %c0_21], %7 {strides = array<i32>} : memref<80x768xf32, #tpu.memory_space<vmem>>, vector<8x768xf32>,
    %c0_22 = arith.constant 0 : index
    %c0_23 = arith.constant 0 : index
    %28 = vector.load %arg4[%c0_22, %c0_23] : memref<80x768xf32, #tpu.memory_space<vmem>>, vector<80x768xf32>
    %cst_24 = arith.constant dense<0.000000e+00> : vector<16x768xf32>
    %29 = tpu.matmul %0, %28, %cst_24 {dimension_numbers = #tpu.dot_dimension_numbers<[1], [0], [0], [1], [0, 0, 1, 1], [], []>} : vector<16x80xf32>, vector<80x768xf32>, vector<16x768xf32> -> vector<16x768xf32>
    %30 = vector.broadcast %1 : vector<16x1xf32> to vector<16x768xf32>
    %31 = arith.addf %29, %30 : vector<16x768xf32>
    %32 = vector.extract_strided_slice %31 {offsets = [0, 0], sizes = [8, 768], strides = [1, 1]} : vector<16x768xf32> to vector<8x768xf32>
    %33 = vector.extract_strided_slice %31 {offsets = [8, 0], sizes = [8, 768], strides = [1, 1]} : vector<16x768xf32> to vector<8x768xf32>
    %cst_25 = arith.constant 0.000000e+00 : f32
    %34 = vector.broadcast %cst_25 : f32 to vector<8x768xf32>
    %35 = arith.maximumf %33, %34 : vector<8x768xf32>
    %36 = vector.broadcast %4 : vector<1x768xf32> to vector<8x768xf32>
    %37 = arith.mulf %35, %36 : vector<8x768xf32>
    %c19_i32_26 = arith.constant 19 : i32
    %38 = tpu.dynamic_rotate %37 by %c19_i32_26 dim 1 : vector<8x768xf32>, i32 -> vector<8x768xf32>
    %c0_27 = arith.constant 0 : index
    %c0_28 = arith.constant 0 : index
    %39 = vector.load %arg4[%c0_27, %c0_28] : memref<80x768xf32, #tpu.memory_space<vmem>>, vector<8x768xf32>
    tpu.vector_store %arg4[%c0_27, %c0_28], %38 {strides = array<i32>} : memref<80x768xf32, #tpu.memory_space<vmem>>, vector<8x768xf32>,
    %c18_i32_29 = arith.constant 18 : i32
    %40 = tpu.dynamic_rotate %37 by %c18_i32_29 dim 1 : vector<8x768xf32>, i32 -> vector<8x768xf32>
    %c8_30 = arith.constant 8 : index
    %c0_31 = arith.constant 0 : index
    %41 = vector.load %arg4[%c8_30, %c0_31] : memref<80x768xf32, #tpu.memory_space<vmem>>, vector<8x768xf32>
    tpu.vector_store %arg4[%c8_30, %c0_31], %40 {strides = array<i32>} : memref<80x768xf32, #tpu.memory_space<vmem>>, vector<8x768xf32>,
    %c17_i32_32 = arith.constant 17 : i32
    %42 = tpu.dynamic_rotate %37 by %c17_i32_32 dim 1 : vector<8x768xf32>, i32 -> vector<8x768xf32>
    %c16_33 = arith.constant 16 : index
    %c0_34 = arith.constant 0 : index
    %43 = vector.load %arg4[%c16_33, %c0_34] : memref<80x768xf32, #tpu.memory_space<vmem>>, vector<8x768xf32>
    tpu.vector_store %arg4[%c16_33, %c0_34], %42 {strides = array<i32>} : memref<80x768xf32, #tpu.memory_space<vmem>>, vector<8x768xf32>,
    %c1_i32_35 = arith.constant 1 : i32
    %44 = tpu.dynamic_rotate %37 by %c1_i32_35 dim 1 : vector<8x768xf32>, i32 -> vector<8x768xf32>
    %c24_36 = arith.constant 24 : index
    %c0_37 = arith.constant 0 : index
    %45 = vector.load %arg4[%c24_36, %c0_37] : memref<80x768xf32, #tpu.memory_space<vmem>>, vector<8x768xf32>
    tpu.vector_store %arg4[%c24_36, %c0_37], %44 {strides = array<i32>} : memref<80x768xf32, #tpu.memory_space<vmem>>, vector<8x768xf32>,
    %c32_38 = arith.constant 32 : index
    %c0_39 = arith.constant 0 : index
    %46 = vector.load %arg4[%c32_38, %c0_39] : memref<80x768xf32, #tpu.memory_space<vmem>>, vector<8x768xf32>
    tpu.vector_store %arg4[%c32_38, %c0_39], %37 {strides = array<i32>} : memref<80x768xf32, #tpu.memory_space<vmem>>, vector<8x768xf32>,
    %c767_i32_40 = arith.constant 767 : i32
    %47 = tpu.dynamic_rotate %37 by %c767_i32_40 dim 1 : vector<8x768xf32>, i32 -> vector<8x768xf32>
    %c40_41 = arith.constant 40 : index
    %c0_42 = arith.constant 0 : index
    %48 = vector.load %arg4[%c40_41, %c0_42] : memref<80x768xf32, #tpu.memory_space<vmem>>, vector<8x768xf32>
    tpu.vector_store %arg4[%c40_41, %c0_42], %47 {strides = array<i32>} : memref<80x768xf32, #tpu.memory_space<vmem>>, vector<8x768xf32>,
    %c751_i32_43 = arith.constant 751 : i32
    %49 = tpu.dynamic_rotate %37 by %c751_i32_43 dim 1 : vector<8x768xf32>, i32 -> vector<8x768xf32>
    %c48_44 = arith.constant 48 : index
    %c0_45 = arith.constant 0 : index
    %50 = vector.load %arg4[%c48_44, %c0_45] : memref<80x768xf32, #tpu.memory_space<vmem>>, vector<8x768xf32>
    tpu.vector_store %arg4[%c48_44, %c0_45], %49 {strides = array<i32>} : memref<80x768xf32, #tpu.memory_space<vmem>>, vector<8x768xf32>,
    %c750_i32_46 = arith.constant 750 : i32
    %51 = tpu.dynamic_rotate %37 by %c750_i32_46 dim 1 : vector<8x768xf32>, i32 -> vector<8x768xf32>
    %c56_47 = arith.constant 56 : index
    %c0_48 = arith.constant 0 : index
    %52 = vector.load %arg4[%c56_47, %c0_48] : memref<80x768xf32, #tpu.memory_space<vmem>>, vector<8x768xf32>
    tpu.vector_store %arg4[%c56_47, %c0_48], %51 {strides = array<i32>} : memref<80x768xf32, #tpu.memory_space<vmem>>, vector<8x768xf32>,
    %c749_i32_49 = arith.constant 749 : i32
    %53 = tpu.dynamic_rotate %37 by %c749_i32_49 dim 1 : vector<8x768xf32>, i32 -> vector<8x768xf32>
    %c64_50 = arith.constant 64 : index
    %c0_51 = arith.constant 0 : index
    %54 = vector.load %arg4[%c64_50, %c0_51] : memref<80x768xf32, #tpu.memory_space<vmem>>, vector<8x768xf32>
    tpu.vector_store %arg4[%c64_50, %c0_51], %53 {strides = array<i32>} : memref<80x768xf32, #tpu.memory_space<vmem>>, vector<8x768xf32>,
    %c0_52 = arith.constant 0 : index
    %c0_53 = arith.constant 0 : index
    %55 = vector.load %arg4[%c0_52, %c0_53] : memref<80x768xf32, #tpu.memory_space<vmem>>, vector<80x768xf32>
    %cst_54 = arith.constant dense<0.000000e+00> : vector<8x768xf32>
    %56 = tpu.matmul %2, %55, %cst_54 {dimension_numbers = #tpu.dot_dimension_numbers<[1], [0], [0], [1], [0, 0, 1, 1], [], []>} : vector<8x80xf32>, vector<80x768xf32>, vector<8x768xf32> -> vector<8x768xf32>
    %57 = vector.broadcast %3 : vector<8x1xf32> to vector<8x768xf32>
    %58 = arith.addf %56, %57 : vector<8x768xf32>
    %59 = arith.addf %32, %58 : vector<8x768xf32>
    %c767_i32_55 = arith.constant 767 : i32
    %60 = tpu.dynamic_rotate %59 by %c767_i32_55 dim 1 : vector<8x768xf32>, i32 -> vector<8x768xf32>
    %61 = arith.addf %59, %60 : vector<8x768xf32>
    %c750_i32_56 = arith.constant 750 : i32
    %62 = tpu.dynamic_rotate %59 by %c750_i32_56 dim 1 : vector<8x768xf32>, i32 -> vector<8x768xf32>
    %63 = arith.addf %61, %62 : vector<8x768xf32>
    %c749_i32_57 = arith.constant 749 : i32
    %64 = tpu.dynamic_rotate %59 by %c749_i32_57 dim 1 : vector<8x768xf32>, i32 -> vector<8x768xf32>
    %65 = arith.addf %63, %64 : vector<8x768xf32>
    %66 = tpu.iota {dimensions = array<i32: 0>} : vector<128x128xi32>
    %cst_58 = arith.constant 0.000000e+00 : f32
    %67 = vector.broadcast %cst_58 : f32 to vector<8x128xf32>
    %c0_i32 = arith.constant 0 : i32
    %68 = vector.broadcast %c0_i32 : i32 to vector<1x128xi32>
    %69 = arith.subi %6, %68 : vector<1x128xi32>
    %70 = vector.broadcast %69 : vector<1x128xi32> to vector<128x128xi32>
    %71 = arith.cmpi eq, %66, %70 : vector<128x128xi32>
    %cst_59 = arith.constant 2.500000e-01 : f32
    %cst_60 = arith.constant 0.000000e+00 : f32
    %72 = vector.broadcast %cst_59 : f32 to vector<128x128xf32>
    %73 = vector.broadcast %cst_60 : f32 to vector<128x128xf32>
    %74 = arith.select %71, %72, %73 : vector<128x128xi1>, vector<128x128xf32>
    %75 = vector.extract_strided_slice %65 {offsets = [0, 0], sizes = [8, 128], strides = [1, 1]} : vector<8x768xf32> to vector<8x128xf32>
    %cst_61 = arith.constant dense<0.000000e+00> : vector<8x128xf32>
    %76 = tpu.matmul %75, %74, %cst_61 {dimension_numbers = #tpu.dot_dimension_numbers<[1], [0], [0], [1], [0, 0, 1, 1], [], []>} : vector<8x128xf32>, vector<128x128xf32>, vector<8x128xf32> -> vector<8x128xf32>
    %77 = arith.addf %67, %76 : vector<8x128xf32>
    %c128_i32 = arith.constant 128 : i32
    %78 = vector.broadcast %c128_i32 : i32 to vector<1x128xi32>
    %79 = arith.subi %6, %78 : vector<1x128xi32>
    %80 = vector.broadcast %79 : vector<1x128xi32> to vector<128x128xi32>
    %81 = arith.cmpi eq, %66, %80 : vector<128x128xi32>
    %cst_62 = arith.constant 2.500000e-01 : f32
    %cst_63 = arith.constant 0.000000e+00 : f32
    %82 = vector.broadcast %cst_62 : f32 to vector<128x128xf32>
    %83 = vector.broadcast %cst_63 : f32 to vector<128x128xf32>
    %84 = arith.select %81, %82, %83 : vector<128x128xi1>, vector<128x128xf32>
    %85 = vector.extract_strided_slice %65 {offsets = [0, 128], sizes = [8, 128], strides = [1, 1]} : vector<8x768xf32> to vector<8x128xf32>
    %cst_64 = arith.constant dense<0.000000e+00> : vector<8x128xf32>
    %86 = tpu.matmul %85, %84, %cst_64 {dimension_numbers = #tpu.dot_dimension_numbers<[1], [0], [0], [1], [0, 0, 1, 1], [], []>} : vector<8x128xf32>, vector<128x128xf32>, vector<8x128xf32> -> vector<8x128xf32>
    %87 = arith.addf %77, %86 : vector<8x128xf32>
    %c256_i32 = arith.constant 256 : i32
    %88 = vector.broadcast %c256_i32 : i32 to vector<1x128xi32>
    %89 = arith.subi %6, %88 : vector<1x128xi32>
    %90 = vector.broadcast %89 : vector<1x128xi32> to vector<128x128xi32>
    %91 = arith.cmpi eq, %66, %90 : vector<128x128xi32>
    %cst_65 = arith.constant 2.500000e-01 : f32
    %cst_66 = arith.constant 0.000000e+00 : f32
    %92 = vector.broadcast %cst_65 : f32 to vector<128x128xf32>
    %93 = vector.broadcast %cst_66 : f32 to vector<128x128xf32>
    %94 = arith.select %91, %92, %93 : vector<128x128xi1>, vector<128x128xf32>
    %95 = vector.extract_strided_slice %65 {offsets = [0, 256], sizes = [8, 128], strides = [1, 1]} : vector<8x768xf32> to vector<8x128xf32>
    %cst_67 = arith.constant dense<0.000000e+00> : vector<8x128xf32>
    %96 = tpu.matmul %95, %94, %cst_67 {dimension_numbers = #tpu.dot_dimension_numbers<[1], [0], [0], [1], [0, 0, 1, 1], [], []>} : vector<8x128xf32>, vector<128x128xf32>, vector<8x128xf32> -> vector<8x128xf32>
    %97 = arith.addf %87, %96 : vector<8x128xf32>
    %c384_i32 = arith.constant 384 : i32
    %98 = vector.broadcast %c384_i32 : i32 to vector<1x128xi32>
    %99 = arith.subi %6, %98 : vector<1x128xi32>
    %100 = vector.broadcast %99 : vector<1x128xi32> to vector<128x128xi32>
    %101 = arith.cmpi eq, %66, %100 : vector<128x128xi32>
    %cst_68 = arith.constant 2.500000e-01 : f32
    %cst_69 = arith.constant 0.000000e+00 : f32
    %102 = vector.broadcast %cst_68 : f32 to vector<128x128xf32>
    %103 = vector.broadcast %cst_69 : f32 to vector<128x128xf32>
    %104 = arith.select %101, %102, %103 : vector<128x128xi1>, vector<128x128xf32>
    %105 = vector.extract_strided_slice %65 {offsets = [0, 384], sizes = [8, 128], strides = [1, 1]} : vector<8x768xf32> to vector<8x128xf32>
    %cst_70 = arith.constant dense<0.000000e+00> : vector<8x128xf32>
    %106 = tpu.matmul %105, %104, %cst_70 {dimension_numbers = #tpu.dot_dimension_numbers<[1], [0], [0], [1], [0, 0, 1, 1], [], []>} : vector<8x128xf32>, vector<128x128xf32>, vector<8x128xf32> -> vector<8x128xf32>
    %107 = arith.addf %97, %106 : vector<8x128xf32>
    %c512_i32 = arith.constant 512 : i32
    %108 = vector.broadcast %c512_i32 : i32 to vector<1x128xi32>
    %109 = arith.subi %6, %108 : vector<1x128xi32>
    %110 = vector.broadcast %109 : vector<1x128xi32> to vector<128x128xi32>
    %111 = arith.cmpi eq, %66, %110 : vector<128x128xi32>
    %cst_71 = arith.constant 2.500000e-01 : f32
    %cst_72 = arith.constant 0.000000e+00 : f32
    %112 = vector.broadcast %cst_71 : f32 to vector<128x128xf32>
    %113 = vector.broadcast %cst_72 : f32 to vector<128x128xf32>
    %114 = arith.select %111, %112, %113 : vector<128x128xi1>, vector<128x128xf32>
    %115 = vector.extract_strided_slice %65 {offsets = [0, 512], sizes = [8, 128], strides = [1, 1]} : vector<8x768xf32> to vector<8x128xf32>
    %cst_73 = arith.constant dense<0.000000e+00> : vector<8x128xf32>
    %116 = tpu.matmul %115, %114, %cst_73 {dimension_numbers = #tpu.dot_dimension_numbers<[1], [0], [0], [1], [0, 0, 1, 1], [], []>} : vector<8x128xf32>, vector<128x128xf32>, vector<8x128xf32> -> vector<8x128xf32>
    %117 = arith.addf %107, %116 : vector<8x128xf32>
    %c0_74 = arith.constant 0 : index
    %c0_75 = arith.constant 0 : index
    %118 = vector.load %arg3[%c0_74, %c0_75] : memref<8x128xf32, #tpu.memory_space<vmem>>, vector<8x128xf32>
    tpu.vector_store %arg3[%c0_74, %c0_75], %117 {strides = array<i32>} : memref<8x128xf32, #tpu.memory_space<vmem>>, vector<8x128xf32>,
    return
  }
  func.func @transform_0(%arg0: i32) -> (i32, i32) {
    %c0_i32 = arith.constant 0 : i32
    %c0_i32_0 = arith.constant 0 : i32
    %c0_i32_1 = arith.constant 0 : i32
    return %c0_i32, %c0_i32_0 : i32, i32
  }
  func.func @transform_1(%arg0: i32) -> (i32, i32) {
    %c0_i32 = arith.constant 0 : i32
    %c0_i32_0 = arith.constant 0 : i32
    %c0_i32_1 = arith.constant 0 : i32
    return %c0_i32, %c0_i32_0 : i32, i32
  }
  func.func @transform_2(%arg0: i32) -> (i32, i32) {
    %c0_i32 = arith.constant 0 : i32
    %c0_i32_0 = arith.constant 0 : i32
    %c0_i32_1 = arith.constant 0 : i32
    return %c0_i32, %c0_i32_0 : i32, i32
  }
}

</mosaic_0001>

<bundles_post_ra>
// kernel: tpu_custom_call.1
= control target key start
LH: loop header
LB: loop body
LE: loop exit
PB: predicated region body
PF: predicated region fallthrough
CT: control target
= control target key end

     0   :  { %7 = vsyncpa [#allocation4], 0  ;;  %s3742_s0 = inlined_call_operand.hbm [shape: f32[8,768], index: 0, kind: input, shape index: {}]   ;;  %s3743_s1 = inlined_call_operand.hbm [shape: f32[26,768], index: 1, kind: input, shape index: {}]   ;;  %s3744_s2 = inlined_call_operand.hbm [shape: f32[8,128], index: 2, kind: output, shape index: {}]  }
   0x1   :  { %8 = vsyncpa [#allocation7], 0 }
   0x2   :  { %9 = vsyncpa [#allocation5], 0  ;;  %s2606_s9 = smov [#allocation3]   ;;  %s2607_s11 = smov [#allocation6]  }
   0x3   :  { %s16_s10 = sshll.u32 %s2606_s9, 4  ;;  %s25_s12 = sshll.u32 %s2607_s11, 4  ;;  %s17_s10 = int_to_ptr.vmem [resolvable:$true] %s16_s10  ;;  %s2639_s12 = int_to_ptr.vmem [resolvable:$true] %s25_s12 }
   0x4   :  { %s2534_s15 = scalar_lea.hbm %s3742_s0, 768 }
   0x5   :  { %p2535_p0 = scmp.ne.s32.totalorder %s3742_s0, %s2534_s15  ;;  %p2538_p1 = scmp.lt.u32.totalorder %s2534_s15, %s3742_s0 }
   0x7   :  { %p2540_p2 = pnand %p2538_p1, %p2535_p0 }
   0x9   :  { %2543 = shalt.err (!%p2540_p2)
}
   0xa   :  { %s2544_s20 = scalar_lea.vmem %s17_s10, 768  ;;  %p2549_p4 = scmp.lt.s32.totalorder %s17_s10, %s17_s10 }
   0xb   :  { %p2545_p3 = scmp.ne.s32.totalorder %s17_s10, %s2544_s20  ;;  %p2550_p5 = scmp.lt.s32.totalorder %s2544_s20, %s2544_s20 }
   0xd   :  { %p2551_p6 = por %p2550_p5, %p2549_p4 }
   0xf   :  { %p2552_p7 = pnand %p2551_p6, %p2545_p3 }
  0x11   :  { %2555 = shalt.err (!%p2552_p7)
}
  0x12   :  { %19 = dma.hbm_to_vmem [thread:$0]  %s3742_s0, 768, %s17_s10, [#allocation4]  }
  0x13   :  { %s2556_s25 = scalar_lea.hbm %s3743_s1, 3072 }
  0x14   :  { %p2557_p8 = scmp.ne.s32.totalorder %s3743_s1, %s2556_s25  ;;  %p2560_p9 = scmp.lt.u32.totalorder %s2556_s25, %s3743_s1 }
  0x16   :  { %p2562_p10 = pnand %p2560_p9, %p2557_p8 }
  0x18   :  { %2565 = shalt.err (!%p2562_p10)
}
  0x19   :  { %s2566_s30 = scalar_lea.vmem %s2639_s12, 3072  ;;  %p2571_p12 = scmp.lt.s32.totalorder %s2639_s12, %s2639_s12 }
  0x1a   :  { %p2567_p11 = scmp.ne.s32.totalorder %s2639_s12, %s2566_s30  ;;  %p2572_p13 = scmp.lt.s32.totalorder %s2566_s30, %s2566_s30 }
  0x1c   :  { %p2573_p0 = por %p2572_p13, %p2571_p12 }
  0x1e   :  { %p2574_p1 = pnand %p2573_p0, %p2567_p11 }
  0x20   :  { %2577 = shalt.err (!%p2574_p1)
}
  0x21   :  { %s2608_s0 = smov 768   ;;  %s2609_s3 = smov 48  }
  0x22   :  { %31 = dma.hbm_to_vmem [thread:$0]  %s3743_s1, 3072, %s2639_s12, [#allocation7], %s2608_s0, %s2608_s0, %s2609_s3  }
  0x23   :  { %2600 = dma.done.wait [#allocation4], 768  }
  0x24   :  { %2601 = vsyncadd [#allocation4], 4294966528 }
  0x25   :  { %2602 = dma.done.wait [#allocation7], 3072  }
  0x26   :  { %2603 = vsyncadd [#allocation7], 4294964224  ;;  %v2670_v0 = vld [vmem:[#allocation3 + $0x10] sm:$0xff]  ;;  %v2672_v1 = vld [vmem:[#allocation3 + $0x28] sm:$0xff]  ;;  %s2610_s1 = smov 19   ;;  %s2611_s6 = smov 18   ;;  %v71_v20 = vlaneseq }
  0x27   :  { %v2674_v2 = vld [vmem:[#allocation3] sm:$0xff]  ;;  %v2677_v3 = vmax.f32 %v2670_v0, 0.0  ;;  %v2680_v4 = vmax.f32 %v2672_v1, 0.0  ;;  %v2682_v5 = vld [vmem:[#allocation3 + $0x8] sm:$0xff]  ;;  %v2698_v10 = vld [vmem:[#allocation3 + $0x18] sm:$0xff]  ;;  %s2612_s7 = smov 1  }
  0x28   :  { %v2685_v6 = vmax.f32 %v2674_v2, 0.0  ;;  %v2688_v7 = vmax.f32 %v2682_v5, 0.0  ;;  %v2702_v11 = vmax.f32 %v2698_v10, 0.0  ;;  %s2613_s8 = smov 17   ;;  %v2705_v12 = vld [vmem:[#allocation3 + $0x20] sm:$0xff]  ;;  %s2614_s9 = smov 127  }
  0x29   :  { %v2371_v8 = vpack.i.bf16 %v2677_v3, %v2680_v4  ;;  %v2711_v14 = vmax.f32 %v2705_v12, 0.0  ;;  %s2615_s10 = smov 110   ;;  %s2616_s11 = smov 111   ;;  %v2617_v17 = vmov 0.0   ;;  %v2754_v18 = vld [vmem:[#allocation6 + $0x30] sm:$0xff]  ;;  %v2619_v19 = vmov 80  }
  0x2a   :  { %v2361_v9 = vpack.i.bf16 %v2688_v7, %v2685_v6  ;;  %v2406_v13 = vpack.i.bf16 %v2702_v11, %v2685_v6  ;;  %v2401_v15 = vpack.i.bf16 %v2677_v3, %v2688_v7  ;;  %412 = vmatprep.mubr.f32.mxu0 %v2617_v17  ;;  %489 = vmatprep.mubr.f32.mxu1 %v2617_v17  ;;  %s2618_s12 = smov 109   ;;  %v2762_v23 = vand.u32 127, %v71_v20  ;;  %s2623_s13 = smov [#allocation8]  }
  0x2b   :  { %2372 = vrot.lane.b32.xlu1 %v2371_v8, %s2610_s1  ;;  %v2416_v16 = vpack.i.bf16 %v2711_v14, %v2702_v11  ;;  %2451 = vset.pattern.permute.xlu0 %v2619_v19  ;;  %vm343_vm8 = vcmask 654336   ;;  %s1713_s14 = sshll.u32 %s2623_s13, 4  ;;  %s1714_s14 = int_to_ptr.vmem [resolvable:$true] %s1713_s14 }
  0x2c   :  { %2362 = vrot.lane.b32.xlu0 %v2361_v9, %s2610_s1  ;;  %2532 = vset.pattern.permute.xlu1 %v2619_v19  ;;  %vm73_vm0 = vcmp.lt.s32.totalorder %v2762_v23, 19  ;;  %vm98_vm1 = vcmp.lt.s32.totalorder %v2762_v23, 18  ;;  %vm123_vm2 = vcmp.lt.s32.totalorder %v2762_v23, 17  ;;  %vm148_vm3 = vcmp.lt.s32.totalorder %v2762_v23, 1  ;;  %s2578_s15 = scalar_lea.vmem %s1714_s14, 128  ;;  %p2583_p3 = scmp.lt.s32.totalorder %s1714_s14, %s1714_s14 }
  0x2d   :  { %vm179_vm4 = vcmp.lt.s32.totalorder %v2762_v23, 127  ;;  %vm229_vm5 = vcmp.lt.s32.totalorder %v2762_v23, 110  ;;  %vm204_vm6 = vcmp.lt.s32.totalorder %v2762_v23, 111  ;;  %vm254_vm7 = vcmp.lt.s32.totalorder %v2762_v23, 109  ;;  %p2579_p2 = scmp.ne.s32.totalorder %s1714_s14, %s2578_s15  ;;  %p2584_p4 = scmp.lt.s32.totalorder %s2578_s15, %s2578_s15 }
  0x2f   :  { %2377 = vrot.lane.b32.xlu1 %v2371_v8, %s2611_s6  ;;  %p2585_p5 = por %p2584_p4, %p2583_p3 }
  0x30   :  { %2367 = vrot.lane.b32.xlu0 %v2361_v9, %s2611_s6 }
  0x31   :  { %p2586_p6 = pnand %p2585_p5, %p2579_p2 }
  0x33   :  { %2387 = vrot.lane.b32.xlu1 %v2361_v9, %s2612_s7 }
  0x34   :  { %2382 = vrot.lane.b32.xlu0 %v2361_v9, %s2613_s8 }
  0x37   :  { %2397 = vrot.lane.b32.xlu1 %v2371_v8, %s2612_s7 }
  0x38   :  { %2392 = vrot.lane.b32.xlu0 %v2371_v8, %s2613_s8 }
  0x3b   :  { %2407 = vrot.lane.b32.xlu1 %v2406_v13, %s2614_s9 }
  0x3c   :  { %2402 = vrot.lane.b32.xlu0 %v2401_v15, %s2614_s9 }
  0x3f   :  { %2417 = vrot.lane.b32.xlu1 %v2416_v16, %s2611_s6 }
  0x40   :  { %2412 = vrot.lane.b32.xlu0 %v2416_v16, %s2610_s1 }
  0x43   :  { %2427 = vrot.lane.b32.xlu1 %v2401_v15, %s2615_s10 }
  0x44   :  { %2422 = vrot.lane.b32.xlu0 %v2401_v15, %s2616_s11 }
  0x47   :  { %217 = vrot.lane.b32.xlu1 %v2685_v6, %s2615_s10 }
  0x48   :  { %2432 = vrot.lane.b32.xlu0 %v2406_v13, %s2616_s11 }
  0x4b   :  { %142 = vrot.lane.b32.xlu1 %v2702_v11, %s2612_s7 }
  0x4c   :  { %117 = vrot.lane.b32.xlu0 %v2702_v11, %s2613_s8 }
  0x4f   :  { %242 = vrot.lane.b32.xlu1 %v2685_v6, %s2618_s12 }
  0x50   :  { %2437 = vrot.lane.b32.xlu0 %v2401_v15, %s2618_s12 }
  0x53   :  { %200 = vrot.lane.b32.xlu1 %v2711_v14, %s2616_s11 }
  0x54   :  { %175 = vrot.lane.b32.xlu0 %v2711_v14, %s2614_s9 }
  0x57   :  { %119 = vrot.lane.b32.xlu1 %v2711_v14, %s2613_s8 }
  0x58   :  { %2442 = vrot.lane.b32.xlu0 %v2416_v16, %s2615_s10 }
  0x5b   :  { %2447 = vrot.lane.b32.xlu1 %v2416_v16, %s2618_s12 }
  0x5c   :  { %144 = vrot.lane.b32.xlu0 %v2711_v14, %s2612_s7 }
  0x5f   :  { %202 = vrot.lane.b32.xlu1 %v2680_v4, %s2616_s11 }
  0x60   :  { %177 = vrot.lane.b32.xlu0 %v2680_v4, %s2614_s9 }
  0x63   :  { %252 = vrot.lane.b32.xlu1 %v2680_v4, %s2618_s12 }
  0x64   :  { %227 = vrot.lane.b32.xlu0 %v2680_v4, %s2615_s10 }
  0x68   :  { %340 = vperm.xlu0 %2451, %v2754_v18  }
  0x9d   :  { %v2757_v21 = vpop.permute.xlu1 %2372 }
  0x9e   :  { %v2759_v22 = vpop.permute.xlu0 %2362  ;;  %v2374_v24 = vunpack.i.l.bf16 %v2757_v21  ;;  %v2375_v63 = vunpack.i.h.bf16 %v2757_v21 }
  0x9f   :  { %v2365_v25 = vunpack.i.h.bf16 %v2759_v22  ;;  %v2364_v26 = vunpack.i.l.bf16 %v2759_v22 }
  0xa1   :  { %v2767_v27 = vpop.permute.xlu1 %2377  ;;  %v78_v33 = vsel %vm73_vm0, %v2364_v26, %v2365_v25  ;;  %v79_v35 = vsel %vm73_vm0, %v2374_v24, %v2364_v26 }
  0xa2   :  { %v2379_v28 = vunpack.i.l.bf16 %v2767_v27  ;;  %v2368_v29 = vpop.permute.xlu0 %2367  ;;  %v2380_v59 = vunpack.i.h.bf16 %v2767_v27 }
  0xa3   :  { %v2370_v30 = vunpack.i.h.bf16 %v2368_v29  ;;  %v2369_v31 = vunpack.i.l.bf16 %v2368_v29 }
  0xa5   :  { %v2774_v32 = vpop.permute.xlu1 %2387  ;;  %v103_v34 = vsel %vm98_vm1, %v2369_v31, %v2370_v30  ;;  %v104_v36 = vsel %vm98_vm1, %v2379_v28, %v2369_v31  ;;  %v102_v26 = vsel %vm98_vm1, %v2370_v30, %v2380_v59  ;;  %v77_v30 = vsel %vm73_vm0, %v2365_v25, %v2375_v63 }
  0xa6   :  { %v2390_v37 = vunpack.i.h.bf16 %v2774_v32  ;;  %v2389_v38 = vunpack.i.l.bf16 %v2774_v32  ;;  %v2792_v39 = vpop.permute.xlu0 %2382  ;;  %v2076_v40 = vpack.c.bf16 %v103_v34, %v78_v33  ;;  %v2078_v41 = vpack.c.bf16 %v104_v36, %v79_v35 }
  0xa7   :  { %v2385_v42 = vunpack.i.h.bf16 %v2792_v39  ;;  %v2384_v43 = vunpack.i.l.bf16 %v2792_v39 }
  0xa8   :  { %2077 = vmatprep.subr.bf16.mxu0 %v2076_v40  ;;  %v153_v44 = vsel %vm148_vm3, %v2389_v38, %v2390_v37 }
  0xa9   :  { %2079 = vmatpush1.bf16.msra.mxu0 %v2078_v41  ;;  %v2800_v45 = vpop.permute.xlu1 %2397  ;;  %v128_v46 = vsel %vm123_vm2, %v2384_v43, %v2385_v42 }
  0xaa   :  { %v2399_v47 = vunpack.i.l.bf16 %v2800_v45  ;;  %v2807_v48 = vpop.permute.xlu0 %2392  ;;  %v2080_v49 = vpack.c.bf16 %v153_v44, %v128_v46  ;;  %v2400_v25 = vunpack.i.h.bf16 %v2800_v45 }
  0xab   :  { %v2394_v50 = vunpack.i.l.bf16 %v2807_v48 }
  0xac   :  { %2081 = vmatprep.subr.bf16.mxu0 %v2080_v49  ;;  %v154_v51 = vsel %vm148_vm3, %v2399_v47, %v2389_v38  ;;  %v2098_v38 = vpack.c.bf16 %v102_v26, %v77_v30 }
  0xad   :  { %v2814_v52 = vpop.permute.xlu1 %2407  ;;  %v129_v53 = vsel %vm123_vm2, %v2394_v50, %v2384_v43  ;;  %v2395_v43 = vunpack.i.h.bf16 %v2807_v48 }
  0xae   :  { %v2409_v54 = vunpack.i.l.bf16 %v2814_v52  ;;  %v2821_v55 = vpop.permute.xlu0 %2402  ;;  %v2082_v56 = vpack.c.bf16 %v154_v51, %v129_v53 }
  0xaf   :  { %v2405_v57 = vunpack.i.h.bf16 %v2821_v55  ;;  %v2404_v58 = vunpack.i.l.bf16 %v2821_v55 }
  0xb0   :  { %2083 = vmatpush1.bf16.msra.mxu0 %v2082_v56 }
  0xb1   :  { %v2827_v60 = vpop.permute.xlu1 %2417  ;;  %v183_v61 = vsel %vm179_vm4, %v2404_v58, %v2405_v57  ;;  %v184_v62 = vsel %vm179_vm4, %v2409_v54, %v2404_v58 }
  0xb2   :  { %v2419_v8 = vunpack.i.l.bf16 %v2827_v60  ;;  %v2839_v9 = vpop.permute.xlu0 %2412  ;;  %v2084_v13 = vpack.c.bf16 %v183_v61, %v2688_v7  ;;  %v2086_v15 = vpack.c.bf16 %v184_v62, %v2685_v6  ;;  %v127_v62 = vsel %vm123_vm2, %v2385_v42, %v2395_v43 }
  0xb3   :  { %v2414_v16 = vunpack.i.l.bf16 %v2839_v9  ;;  %v2415_v26 = vunpack.i.h.bf16 %v2839_v9 }
  0xb4   :  { %2085 = vmatprep.subr.bf16.mxu0 %v2084_v13  ;;  %v101_v19 = vsel %vm98_vm1, %v2380_v59, %v2419_v8 }
  0xb5   :  { %2087 = vmatpush1.bf16.msra.mxu0 %v2086_v15  ;;  %v2850_v29 = vpop.permute.xlu1 %2427  ;;  %v76_v31 = vsel %vm73_vm0, %v2375_v63, %v2414_v16  ;;  %v152_v63 = vsel %vm148_vm3, %v2390_v37, %v2400_v25  ;;  %v75_v27 = vsel %vm73_vm0, %v2414_v16, %v2415_v26 }
  0xb6   :  { %v2430_v6 = vunpack.i.h.bf16 %v2850_v29  ;;  %v2429_v7 = vunpack.i.l.bf16 %v2850_v29  ;;  %v2858_v33 = vpop.permute.xlu0 %2422  ;;  %v2096_v34 = vpack.c.bf16 %v101_v19, %v76_v31  ;;  %v2420_v19 = vunpack.i.h.bf16 %v2827_v60  ;;  %v2941_v60 = vld [vmem:[#allocation6] sm:$0xff] }
  0xb7   :  { %v2425_v35 = vunpack.i.h.bf16 %v2858_v33  ;;  %v2424_v36 = vunpack.i.l.bf16 %v2858_v33  ;;  %v2102_v39 = vpack.c.bf16 %v152_v63, %v127_v62 }
  0xb8   :  { %2097 = vmatprep.subr.bf16.mxu1 %v2096_v34  ;;  %v233_v40 = vsel %vm229_vm5, %v2429_v7, %v2430_v6  ;;  %v100_v21 = vsel %vm98_vm1, %v2419_v8, %v2420_v19 }
  0xb9   :  { %2099 = vmatpush1.bf16.msra.mxu1 %v2098_v38  ;;  %v2870_v41 = vpop.permute.xlu1 %217  ;;  %v208_v22 = vsel %vm204_vm6, %v2424_v36, %v2425_v35  ;;  %v99_v38 = vsel %vm98_vm1, %v2420_v19, %v2379_v28 }
  0xba   :  { %v2878_v44 = vpop.permute.xlu0 %2432  ;;  %v2088_v46 = vpack.c.bf16 %v233_v40, %v208_v22  ;;  %v234_v51 = vsel %vm229_vm5, %v2870_v41, %v2429_v7  ;;  %v2410_v7 = vunpack.i.h.bf16 %v2814_v52 }
  0xbb   :  { %v2434_v49 = vunpack.i.l.bf16 %v2878_v44  ;;  %v2435_v28 = vunpack.i.h.bf16 %v2878_v44 }
  0xbc   :  { %2089 = vmatprep.subr.bf16.mxu0 %v2088_v46 }
  0xbd   :  { %v2884_v53 = vpop.permute.xlu1 %142  ;;  %v209_v56 = vsel %vm204_vm6, %v2434_v49, %v2424_v36  ;;  %v74_v36 = vsel %vm73_vm0, %v2415_v26, %v2374_v24 }
  0xbe   :  { %v151_v58 = vsel %vm148_vm3, %v2400_v25, %v2884_v53  ;;  %v118_v59 = vpop.permute.xlu0 %117  ;;  %v2090_v61 = vpack.c.bf16 %v234_v51, %v209_v56  ;;  %v2116_v55 = vpack.c.bf16 %v99_v38, %v74_v36  ;;  %v2118_v56 = vpack.c.bf16 %v100_v21, %v75_v27  ;;  %v43_v21 = vld [vmem:[#allocation6 + $0x90] ss:$8 sm:$0x30] }
  0xbf   :  { %v126_v13 = vsel %vm123_vm2, %v2395_v43, %v118_v59  ;;  %v182_v43 = vsel %vm179_vm4, %v2405_v57, %v2410_v7 }
  0xc0   :  { %v2100_v15 = vpack.c.bf16 %v151_v58, %v126_v13  ;;  %2091 = vmatpush1.bf16.msra.mxu0 %v2090_v61  ;;  %v2106_v57 = vpack.c.bf16 %v182_v43, %v2677_v3  ;;  %v42_v43 = vld [vmem:[#allocation6 + $0x90] ss:$8 sm:$0xf] }
  0xc1   :  { %v2905_v31 = vpop.permute.xlu1 %242  ;;  %v44_v27 = vor.u32 %v43_v21, %v42_v43 }
  0xc2   :  { %v2438_v42 = vpop.permute.xlu0 %2437  ;;  %2101 = vmatprep.subr.bf16.mxu1 %v2100_v15 }
  0xc3   :  { %v2440_v32 = vunpack.i.h.bf16 %v2438_v42  ;;  %v2439_v37 = vunpack.i.l.bf16 %v2438_v42  ;;  %2103 = vmatpush1.bf16.msra.mxu1 %v2102_v39 }
  0xc5   :  { %v2909_v34 = vpop.permute.xlu1 %200  ;;  %v258_v30 = vsel %vm254_vm7, %v2439_v37, %v2440_v32  ;;  %v259_v9 = vsel %vm254_vm7, %v2905_v31, %v2439_v37 }
  0xc6   :  { %v176_v40 = vpop.permute.xlu0 %175  ;;  %v2092_v22 = vpack.c.bf16 %v2682_v5, %v258_v30  ;;  %v2094_v25 = vpack.c.bf16 %v2674_v2, %v259_v9  ;;  %v206_v3 = vsel %vm204_vm6, %v2435_v28, %v2909_v34 }
  0xc7   :  { %v181_v24 = vsel %vm179_vm4, %v2410_v7, %v176_v40 }
  0xc8   :  { %v2104_v46 = vpack.c.bf16 %v181_v24, %v2702_v11  ;;  %2093 = vmatprep.subr.bf16.mxu0 %v2092_v22  ;;  %v207_v11 = vsel %vm204_vm6, %v2425_v35, %v2435_v28 }
  0xc9   :  { %2095 = vmatpush1.bf16.msra.mxu0 %v2094_v25  ;;  %v120_v51 = vpop.permute.xlu1 %119  ;;  %v3021_v25 = vshrl.u32 %v71_v20, 7 }
  0xca   :  { %v2443_v8 = vpop.permute.xlu0 %2442  ;;  %2105 = vmatprep.subr.bf16.mxu1 %v2104_v46  ;;  %2117 = vmatprep.subr.bf16.mxu0 %v2116_v55  ;;  %v124_v26 = vsel %vm123_vm2, %v120_v51, %v2394_v50  ;;  %v125_v39 = vsel %vm123_vm2, %v118_v59, %v120_v51 }
  0xcb   :  { %v2445_v58 = vunpack.i.h.bf16 %v2443_v8  ;;  %v2444_v61 = vunpack.i.l.bf16 %v2443_v8  ;;  %2107 = vmatpush1.bf16.msra.mxu1 %v2106_v57  ;;  %v588_v28 = vsub.s32 0, %v3021_v25  ;;  %v592_v46 = vsub.s32 1, %v3021_v25 }
  0xcc   :  { %1723 = vmatmul.mubr.msk.f32.vlgmr.msra.gmra.mrb[0].mxu0 %vm343_vm8, %v2941_v60  ;;  %v596_v57 = vsub.s32 2, %v3021_v25 }
  0xcd   :  { %2119 = vmatpush1.bf16.msra.mxu0 %v2118_v56  ;;  %v2448_v16 = vpop.permute.xlu1 %2447  ;;  %v231_v62 = vsel %vm229_vm5, %v2444_v61, %v2445_v58  ;;  %v232_v63 = vsel %vm229_vm5, %v2430_v6, %v2444_v61  ;;  %418 = vmatprep.mubr.f32.mxu0 %v2617_v17  ;;  %v593_v8 = vrot.slane %v44_v27, %v592_v46 }
  0xce   :  { %v2450_v33 = vunpack.i.h.bf16 %v2448_v16  ;;  %v2449_v13 = vunpack.i.l.bf16 %v2448_v16  ;;  %v145_v15 = vpop.permute.xlu0 %144  ;;  %v2108_v35 = vpack.c.bf16 %v231_v62, %v206_v3  ;;  %v2110_v19 = vpack.c.bf16 %v232_v63, %v207_v11 }
  0xcf   :  { %v149_v29 = vsel %vm148_vm3, %v145_v15, %v2399_v47  ;;  %v150_v6 = vsel %vm148_vm3, %v2884_v53, %v145_v15  ;;  %v597_v3 = vrot.slane %v44_v27, %v596_v57 }
  0xd0   :  { %v2120_v7 = vpack.c.bf16 %v149_v29, %v124_v26  ;;  %v2122_v42 = vpack.c.bf16 %v150_v6, %v125_v39  ;;  %2109 = vmatprep.subr.bf16.mxu1 %v2108_v35  ;;  %v256_v48 = vsel %vm254_vm7, %v2449_v13, %v2450_v33  ;;  %v257_v50 = vsel %vm254_vm7, %v2440_v32, %v2449_v13 }
  0xd1   :  { %2111 = vmatpush1.bf16.msra.mxu1 %v2110_v19  ;;  %v203_v59 = vpop.permute.xlu1 %202  ;;  %v2112_v45 = vpack.c.bf16 %v2698_v10, %v256_v48  ;;  %v2114_v37 = vpack.c.bf16 %v2670_v0, %v257_v50  ;;  %1724 = vmatmul.mubr.msk.f32.gmra.mrb[2].mxu0 %vm343_vm8, %v2754_v18  ;;  %v604_v39 = vsub.s32 4, %v3021_v25 }
  0xd2   :  { %v178_v47 = vpop.permute.xlu0 %177  ;;  %2121 = vmatprep.subr.bf16.mxu0 %v2120_v7  ;;  %566 = vmatprep.mubr.f32.mxu0 %v2617_v17  ;;  %v205_v38 = vsel %vm204_vm6, %v2909_v34, %v203_v59  ;;  %v210_v52 = vsel %vm204_vm6, %v203_v59, %v2434_v49 }
  0xd3   :  { %v180_v53 = vsel %vm179_vm4, %v176_v40, %v178_v47  ;;  %v185_v32 = vsel %vm179_vm4, %v178_v47, %v2409_v54  ;;  %2123 = vmatpush1.bf16.msra.mxu0 %v2122_v42  ;;  %2113 = vmatprep.subr.bf16.mxu1 %v2112_v45  ;;  %v605_v50 = vrot.slane %v44_v27, %v604_v39 }
  0xd4   :  { %v2124_v30 = vpack.c.bf16 %v185_v32, %v2680_v4  ;;  %v2126_v9 = vpack.c.bf16 %v180_v53, %v2711_v14  ;;  %v608_v53 = vsub.s32 5, %v3021_v25 }
  0xd5   :  { %2115 = vmatpush1.bf16.msra.mxu1 %v2114_v37  ;;  %v253_v36 = vpop.permute.xlu1 %252 }
  0xd6   :  { %v228_v22 = vpop.permute.xlu0 %227  ;;  %2125 = vmatprep.subr.bf16.mxu0 %v2124_v30  ;;  %v260_v54 = vsel %vm254_vm7, %v253_v36, %v2905_v31  ;;  %v255_v44 = vsel %vm254_vm7, %v2450_v33, %v253_v36  ;;  %v609_v30 = vrot.slane %v44_v27, %v608_v53 }
  0xd7   :  { %v230_v4 = vsel %vm229_vm5, %v2445_v58, %v228_v22  ;;  %v235_v14 = vsel %vm229_vm5, %v228_v22, %v2870_v41  ;;  %2127 = vmatpush1.bf16.msra.mxu0 %v2126_v9  ;;  %v2132_v49 = vpack.c.bf16 %v2672_v1, %v260_v54  ;;  %v2134_v41 = vpack.c.bf16 %v2705_v12, %v255_v44 }
  0xd8   :  { %v2128_v34 = vpack.c.bf16 %v235_v14, %v210_v52  ;;  %v2130_v40 = vpack.c.bf16 %v230_v4, %v205_v38  ;;  %1725 = vmatmul.mubr.msk.f32.vlgmr.msra.gmra.mrb[0].mxu1 %vm343_vm8, %v2941_v60  ;;  %v600_v58 = vsub.s32 3, %v3021_v25  ;;  %v3098_v38 = vld [vmem:[#allocation6 + $0x60] sm:$0xff] }
  0xd9   :  { %495 = vmatprep.mubr.f32.mxu1 %v2617_v17 }
  0xda   :  { %2129 = vmatprep.subr.bf16.mxu0 %v2128_v34  ;;  %v601_v33 = vrot.slane %v44_v27, %v600_v58 }
  0xdb   :  { %2131 = vmatpush1.bf16.msra.mxu0 %v2130_v40 }
  0xdc   :  { %1726 = vmatmul.mubr.msk.f32.gmra.mrb[2].mxu1 %vm343_vm8, %v2754_v18  ;;  %2133 = vmatprep.subr.bf16.mxu0 %v2132_v49 }
  0xdd   :  { %1022 = vmatprep.mubr.f32.mxu1 %v2617_v17 }
  0xdf   :  { %2135 = vmatpush1.bf16.msra.mxu0 %v2134_v41 }
  0xe2   :  { %1727 = vmatmul.mubr.msk.f32.vlgmr.msra.gmra.mrb[4].mxu0 %vm343_vm8, %v2941_v60 }
  0xe3   :  { %572 = vmatprep.mubr.f32.mxu0 %v2617_v17 }
  0xe6   :  { %1728 = vmatmul.mubr.msk.f32.gmra.mrb[6].mxu0 %vm343_vm8, %v2754_v18  ;;  %v589_v18 = vrot.slane %v44_v27, %v588_v28 }
  0xe7   :  { %951 = vmatprep.mubr.f32.mxu0 %v2617_v17  ;;  %v341_v24 = vpop.permute.xlu0 %340 }
 0x1a4   :  { %v420_v1 = vpop.f32.mrb[2].mxu0 }
 0x1a5   :  { %v422_v31 = vpop.f32.mrb[3].mxu0  ;;  %v421_v55 = vadd.f32 %v420_v1, %v341_v24 }
 0x1a6   :  { %v423_v51 = vadd.f32 %v422_v31, %v341_v24 }
 0x1a7   :  { %v579_v61 = vmax.f32 %v421_v55, 0.0 }
 0x1a8   :  { %v580_v20 = vmax.f32 %v423_v51, 0.0 }
 0x1a9   :  { %v3027_v13 = vmul.f32 %v589_v18, %v579_v61 }
 0x1aa   :  { %v3029_v15 = vmul.f32 %v593_v8, %v580_v20 }
 0x1ac   :  { %v2462_v29 = vpack.i.bf16 %v3027_v13, %v3029_v15 }
 0x1af   :  { %v497_v56 = vpop.f32.mrb[2].mxu1 }
 0x1b0   :  { %v498_v11 = vadd.f32 %v497_v56, %v341_v24  ;;  %v499_v16 = vpop.f32.mrb[3].mxu1 }
 0x1b1   :  { %v500_v62 = vadd.f32 %v499_v16, %v341_v24 }
 0x1b2   :  { %v581_v63 = vmax.f32 %v498_v11, 0.0 }
 0x1b3   :  { %v582_v19 = vmax.f32 %v500_v62, 0.0 }
 0x1b4   :  { %v3031_v35 = vmul.f32 %v597_v3, %v581_v63 }
 0x1b5   :  { %v3037_v26 = vmul.f32 %v601_v33, %v582_v19 }
 0x1b6   :  { %752 = vrot.lane.b32.xlu0 %v3031_v35, %s2616_s11  ;;  %728 = vrot.lane.b32.xlu1 %v3031_v35, %s2614_s9 }
 0x1b7   :  { %v2452_v59 = vpack.i.bf16 %v3037_v26, %v3031_v35 }
 0x1b9   :  { %v574_v6 = vpop.f32.mrb[6].mxu0 }
 0x1ba   :  { %v575_v7 = vadd.f32 %v574_v6, %v341_v24  ;;  %776 = vrot.lane.b32.xlu1 %v3031_v35, %s2615_s10  ;;  %v576_v42 = vpop.f32.mrb[7].mxu0  ;;  %2463 = vrot.lane.b32.xlu0 %v2462_v29, %s2610_s1 }
 0x1bb   :  { %v577_v47 = vadd.f32 %v576_v42, %v341_v24 }
 0x1bc   :  { %v583_v48 = vmax.f32 %v575_v7, 0.0 }
 0x1bd   :  { %v584_v32 = vmax.f32 %v577_v47, 0.0 }
 0x1be   :  { %2453 = vrot.lane.b32.xlu1 %v2452_v59, %s2610_s1  ;;  %2473 = vrot.lane.b32.xlu0 %v2452_v59, %s2613_s8  ;;  %v3049_v45 = vmul.f32 %v605_v50, %v583_v48 }
 0x1bf   :  { %v3063_v9 = vmul.f32 %v609_v30, %v584_v32 }
 0x1c0   :  { %v2487_v37 = vpack.i.bf16 %v3049_v45, %v3037_v26 }
 0x1c1   :  { %v2507_v36 = vpack.i.bf16 %v3063_v9, %v3027_v13 }
 0x1c2   :  { %2458 = vrot.lane.b32.xlu1 %v2452_v59, %s2611_s6  ;;  %2483 = vrot.lane.b32.xlu0 %v2462_v29, %s2613_s8 }
 0x1c6   :  { %2468 = vrot.lane.b32.xlu1 %v2462_v29, %s2611_s6  ;;  %2488 = vrot.lane.b32.xlu0 %v2487_v37, %s2614_s9 }
 0x1ca   :  { %2478 = vrot.lane.b32.xlu1 %v2452_v59, %s2612_s7  ;;  %2493 = vrot.lane.b32.xlu0 %v2487_v37, %s2616_s11 }
 0x1ce   :  { %696 = vrot.lane.b32.xlu1 %v3029_v15, %s2612_s7  ;;  %2503 = vrot.lane.b32.xlu0 %v2487_v37, %s2618_s12 }
 0x1d2   :  { %2498 = vrot.lane.b32.xlu1 %v2487_v37, %s2615_s10  ;;  %632 = vrot.lane.b32.xlu0 %v3063_v9, %s2610_s1 }
 0x1d6   :  { %656 = vrot.lane.b32.xlu1 %v3063_v9, %s2611_s6  ;;  %800 = vrot.lane.b32.xlu0 %v3031_v35, %s2618_s12 }
 0x1da   :  { %2508 = vrot.lane.b32.xlu1 %v2507_v36, %s2612_s7  ;;  %2513 = vrot.lane.b32.xlu0 %v2462_v29, %s2614_s9 }
 0x1de   :  { %680 = vrot.lane.b32.xlu1 %v3063_v9, %s2613_s8  ;;  %2523 = vrot.lane.b32.xlu0 %v2462_v29, %s2615_s10 }
 0x1e2   :  { %2518 = vrot.lane.b32.xlu1 %v2462_v29, %s2616_s11  ;;  %630 = vrot.lane.b32.xlu0 %v3049_v45, %s2610_s1 }
 0x1e6   :  { %2528 = vrot.lane.b32.xlu1 %v2462_v29, %s2618_s12  ;;  %678 = vrot.lane.b32.xlu0 %v3049_v45, %s2613_s8 }
 0x1ea   :  { %654 = vrot.lane.b32.xlu1 %v3049_v45, %s2611_s6  ;;  %734 = vrot.lane.b32.xlu0 %v3063_v9, %s2614_s9 }
 0x1ee   :  { %702 = vrot.lane.b32.xlu1 %v3049_v45, %s2612_s7  ;;  %782 = vrot.lane.b32.xlu0 %v3063_v9, %s2615_s10 }
 0x1f2   :  { %758 = vrot.lane.b32.xlu1 %v3063_v9, %s2616_s11  ;;  %335 = vperm.xlu0 %2451, %v2941_v60  }
 0x1f6   :  { %806 = vrot.lane.b32.xlu1 %v3063_v9, %s2618_s12 }
 0x1fa   :  { %882 = vperm.xlu1 %2532, %v3098_v38  }
 0x228   :  { %v3101_v22 = vpop.permute.xlu0 %752  ;;  %v3103_v52 = vpop.permute.xlu1 %728 }
 0x22c   :  { %v3105_v54 = vpop.permute.xlu1 %776  ;;  %v3107_v4 = vpop.permute.xlu0 %2463 }
 0x22d   :  { %v2466_v31 = vunpack.i.h.bf16 %v3107_v4  ;;  %v2465_v43 = vunpack.i.l.bf16 %v3107_v4 }
 0x22f   :  { %v638_v18 = vsel %vm73_vm0, %v2466_v31, %v2465_v43 }
 0x230   :  { %v3109_v14 = vpop.permute.xlu1 %2453  ;;  %v3111_v34 = vpop.permute.xlu0 %2473 }
 0x231   :  { %v2456_v60 = vunpack.i.h.bf16 %v3109_v14  ;;  %v2455_v40 = vunpack.i.l.bf16 %v3109_v14  ;;  %v2476_v57 = vunpack.i.h.bf16 %v3111_v34  ;;  %v2475_v56 = vunpack.i.l.bf16 %v3111_v34 }
 0x233   :  { %v636_v21 = vsel %vm73_vm0, %v2455_v40, %v2456_v60  ;;  %v637_v8 = vsel %vm73_vm0, %v2465_v43, %v2455_v40  ;;  %v684_v29 = vsel %vm123_vm2, %v2475_v56, %v2476_v57 }
 0x234   :  { %v3115_v44 = vpop.permute.xlu1 %2458  ;;  %v3117_v49 = vpop.permute.xlu0 %2483 }
 0x235   :  { %v2461_v41 = vunpack.i.h.bf16 %v3115_v44  ;;  %v2460_v1 = vunpack.i.l.bf16 %v3115_v44  ;;  %v2485_v33 = vunpack.i.l.bf16 %v3117_v49 }
 0x237   :  { %v660_v24 = vsel %vm98_vm1, %v2460_v1, %v2461_v41  ;;  %v685_v59 = vsel %vm123_vm2, %v2485_v33, %v2475_v56 }
 0x238   :  { %v2469_v27 = vpop.permute.xlu1 %2468  ;;  %v3131_v28 = vpop.permute.xlu0 %2488  ;;  %v2156_v46 = vpack.c.bf16 %v660_v24, %v636_v21 }
 0x239   :  { %v2471_v55 = vunpack.i.h.bf16 %v2469_v27  ;;  %v2470_v51 = vunpack.i.l.bf16 %v2469_v27  ;;  %v2491_v11 = vunpack.i.h.bf16 %v3131_v28  ;;  %v2490_v3 = vunpack.i.l.bf16 %v3131_v28 }
 0x23a   :  { %2157 = vmatprep.subr.bf16.mxu1 %v2156_v46 }
 0x23b   :  { %v661_v58 = vsel %vm98_vm1, %v2470_v51, %v2460_v1  ;;  %v662_v61 = vsel %vm98_vm1, %v2471_v55, %v2470_v51  ;;  %v737_v50 = vsel %vm179_vm4, %v2490_v3, %v2491_v11  ;;  %v738_v53 = vsel %vm179_vm4, %v3103_v52, %v2490_v3 }
 0x23c   :  { %v2158_v20 = vpack.c.bf16 %v661_v58, %v637_v8  ;;  %v3145_v16 = vpop.permute.xlu1 %2478  ;;  %v3147_v62 = vpop.permute.xlu0 %2493  ;;  %v2136_v63 = vpack.c.bf16 %v662_v61, %v638_v18  ;;  %v2164_v36 = vpack.c.bf16 %v737_v50, %v3037_v26  ;;  %v2166_v27 = vpack.c.bf16 %v738_v53, %v3031_v35 }
 0x23d   :  { %v2481_v19 = vunpack.i.h.bf16 %v3145_v16  ;;  %v2480_v39 = vunpack.i.l.bf16 %v3145_v16  ;;  %v2496_v32 = vunpack.i.h.bf16 %v3147_v62  ;;  %v2495_v30 = vunpack.i.l.bf16 %v3147_v62 }
 0x23e   :  { %2137 = vmatprep.subr.bf16.mxu0 %v2136_v63  ;;  %2159 = vmatpush1.bf16.msra.mxu1 %v2158_v20 }
 0x23f   :  { %v708_v6 = vsel %vm148_vm3, %v2480_v39, %v2481_v19  ;;  %v761_v46 = vsel %vm204_vm6, %v2495_v30, %v2496_v32  ;;  %v762_v58 = vsel %vm204_vm6, %v3101_v22, %v2495_v30 }
 0x240   :  { %v697_v7 = vpop.permute.xlu1 %696  ;;  %v3160_v42 = vpop.permute.xlu0 %2503  ;;  %v2160_v48 = vpack.c.bf16 %v708_v6, %v684_v29 }
 0x241   :  { %v709_v37 = vsel %vm148_vm3, %v697_v7, %v2480_v39  ;;  %v2506_v4 = vunpack.i.h.bf16 %v3160_v42  ;;  %v2505_v40 = vunpack.i.l.bf16 %v3160_v42  ;;  %v2486_v39 = vunpack.i.h.bf16 %v3117_v49 }
 0x242   :  { %v2162_v47 = vpack.c.bf16 %v709_v37, %v685_v59  ;;  %2161 = vmatprep.subr.bf16.mxu1 %v2160_v48 }
 0x243   :  { %v809_v35 = vsel %vm254_vm7, %v2505_v40, %v2506_v4 }
 0x244   :  { %v3178_v1 = vpop.permute.xlu1 %2498  ;;  %v3180_v43 = vpop.permute.xlu0 %632  ;;  %2163 = vmatpush1.bf16.msra.mxu1 %v2162_v47  ;;  %v2172_v6 = vpack.c.bf16 %v2698_v10, %v809_v35  ;;  %v686_v10 = vsel %vm123_vm2, %v2486_v39, %v2485_v33 }
 0x245   :  { %v2501_v21 = vunpack.i.h.bf16 %v3178_v1  ;;  %v2500_v24 = vunpack.i.l.bf16 %v3178_v1  ;;  %2165 = vmatprep.subr.bf16.mxu1 %v2164_v36  ;;  %v639_v61 = vsel %vm73_vm0, %v3180_v43, %v2466_v31  ;;  %v45_v1 = vld [vmem:[#allocation6 + $0x91] ss:$0 sm:$0xff] }
 0x247   :  { %v786_v26 = vsel %vm229_vm5, %v3105_v54, %v2500_v24  ;;  %v785_v51 = vsel %vm229_vm5, %v2500_v24, %v2501_v21 }
 0x248   :  { %v3196_v18 = vpop.permute.xlu1 %656  ;;  %v801_v8 = vpop.permute.xlu0 %800  ;;  %2167 = vmatpush1.bf16.msra.mxu1 %v2166_v27  ;;  %v2168_v56 = vpack.c.bf16 %v785_v51, %v761_v46  ;;  %v2170_v3 = vpack.c.bf16 %v786_v26, %v762_v58 }
 0x249   :  { %v663_v20 = vsel %vm98_vm1, %v3196_v18, %v2471_v55  ;;  %v810_v29 = vsel %vm254_vm7, %v801_v8, %v2505_v40 }
 0x24a   :  { %v2138_v63 = vpack.c.bf16 %v663_v20, %v639_v61  ;;  %2169 = vmatprep.subr.bf16.mxu1 %v2168_v56  ;;  %v2174_v49 = vpack.c.bf16 %v2670_v0, %v810_v29 }
 0x24c   :  { %v3215_v48 = vpop.permute.xlu1 %2508  ;;  %v3217_v50 = vpop.permute.xlu0 %2513  ;;  %2139 = vmatpush1.bf16.msra.mxu0 %v2138_v63  ;;  %2171 = vmatpush1.bf16.msra.mxu1 %v2170_v3 }
 0x24d   :  { %v2511_v31 = vunpack.i.h.bf16 %v3215_v48  ;;  %v2510_v55 = vunpack.i.l.bf16 %v3215_v48  ;;  %v2515_v59 = vunpack.i.l.bf16 %v3217_v50  ;;  %2173 = vmatprep.subr.bf16.mxu1 %v2172_v6  ;;  %v2516_v37 = vunpack.i.h.bf16 %v3217_v50 }
 0x24f   :  { %v710_v47 = vsel %vm148_vm3, %v2510_v55, %v697_v7  ;;  %v739_v40 = vsel %vm179_vm4, %v2515_v59, %v3103_v52  ;;  %v711_v24 = vsel %vm148_vm3, %v2511_v31, %v2510_v55  ;;  %v740_v33 = vsel %vm179_vm4, %v2516_v37, %v2515_v59 }
 0x250   :  { %v681_v53 = vpop.permute.xlu1 %680  ;;  %v3228_v30 = vpop.permute.xlu0 %2523  ;;  %2175 = vmatpush1.bf16.msra.mxu1 %v2174_v49  ;;  %v2140_v36 = vpack.c.bf16 %v710_v47, %v686_v10  ;;  %v2144_v26 = vpack.c.bf16 %v739_v40, %v3029_v15  ;;  %v2146_v58 = vpack.c.bf16 %v740_v33, %v3027_v13 }
 0x251   :  { %v687_v0 = vsel %vm123_vm2, %v681_v53, %v2486_v39  ;;  %v2525_v7 = vunpack.i.l.bf16 %v3228_v30  ;;  %v2526_v52 = vunpack.i.h.bf16 %v3228_v30 }
 0x252   :  { %v2142_v27 = vpack.c.bf16 %v711_v24, %v687_v0  ;;  %2141 = vmatprep.subr.bf16.mxu0 %v2140_v36 }
 0x253   :  { %1730 = vmatmul.mubr.msk.f32.vlgmr.msra.gmra.mrb[0].mxu1 %vm343_vm8, %v3098_v38  ;;  %v787_v15 = vsel %vm229_vm5, %v2525_v7, %v3105_v54  ;;  %v788_v39 = vsel %vm229_vm5, %v2526_v52, %v2525_v7  ;;  %v2620_v7 = vmov 0.0|0.0  }
 0x254   :  { %v2519_v46 = vpop.permute.xlu1 %2518  ;;  %2143 = vmatpush1.bf16.msra.mxu0 %v2142_v27  ;;  %v631_v35 = vpop.permute.xlu0 %630  ;;  %v2533_v27 = vld [vmem:[#allocation3 + $0x28] sm:$0xff]  ;;  %2244 = vmatprep.subr.bf16.mxu1 %v2620_v7 }
 0x255   :  { %v2521_v51 = vunpack.i.h.bf16 %v2519_v46  ;;  %v2520_v56 = vunpack.i.l.bf16 %v2519_v46  ;;  %2145 = vmatprep.subr.bf16.mxu0 %v2144_v26  ;;  %v634_v59 = vsel %vm73_vm0, %v631_v35, %v3180_v43  ;;  %v3327_v26 = vadd.s32 16, %v3021_v25 }
 0x257   :  { %v764_v61 = vsel %vm204_vm6, %v2521_v51, %v2520_v56  ;;  %v763_v20 = vsel %vm204_vm6, %v2520_v56, %v3101_v22  ;;  %v2621_v56 = vmov 0.25|0.25  }
 0x258   :  { %v2529_v3 = vpop.permute.xlu1 %2528  ;;  %2147 = vmatpush1.bf16.msra.mxu0 %v2146_v58  ;;  %v2148_v63 = vpack.c.bf16 %v787_v15, %v763_v20  ;;  %v2150_v13 = vpack.c.bf16 %v788_v39, %v764_v61  ;;  %v679_v50 = vpop.permute.xlu0 %678  ;;  %v3366_v58 = vadd.s32 56, %v3021_v25  ;;  %v3377_v61 = vadd.s32 64, %v3021_v25 }
 0x259   :  { %v2531_v29 = vunpack.i.h.bf16 %v2529_v3  ;;  %v2530_v6 = vunpack.i.l.bf16 %v2529_v3  ;;  %v682_v43 = vsel %vm123_vm2, %v679_v50, %v681_v53  ;;  %v3380_v20 = vadd.s32 72, %v3021_v25 }
 0x25a   :  { %2149 = vmatprep.subr.bf16.mxu0 %v2148_v63  ;;  %v3393_v15 = vadd.s32 80, %v3021_v25  ;;  %v3396_v3 = vadd.s32 88, %v3021_v25  ;;  %v3410_v63 = vadd.s32 96, %v3021_v25  ;;  %v3413_v39 = vadd.s32 104, %v3021_v25 }
 0x25b   :  { %v812_v48 = vsel %vm254_vm7, %v2531_v29, %v2530_v6  ;;  %v811_v22 = vsel %vm254_vm7, %v2530_v6, %v801_v8  ;;  %v3428_v6 = vadd.s32 112, %v3021_v25 }
 0x25c   :  { %v655_v55 = vpop.permute.xlu1 %654  ;;  %2151 = vmatpush1.bf16.msra.mxu0 %v2150_v13  ;;  %v2152_v54 = vpack.c.bf16 %v2682_v5, %v811_v22  ;;  %v2154_v10 = vpack.c.bf16 %v2674_v2, %v812_v48  ;;  %v635_v5 = vsel %vm73_vm0, %v2456_v60, %v631_v35  ;;  %v3363_v35 = vadd.s32 48, %v3021_v25 }
 0x25d   :  { %v658_v49 = vsel %vm98_vm1, %v655_v55, %v3196_v18  ;;  %v659_v8 = vsel %vm98_vm1, %v2461_v41, %v655_v55  ;;  %v735_v18 = vpop.permute.xlu0 %734  ;;  %v3431_v13 = vadd.s32 120, %v3021_v25 }
 0x25e   :  { %v2176_v47 = vpack.c.bf16 %v658_v49, %v634_v59  ;;  %2153 = vmatprep.subr.bf16.mxu0 %v2152_v54  ;;  %v2178_v36 = vpack.c.bf16 %v659_v8, %v635_v5  ;;  %v741_v14 = vsel %vm179_vm4, %v735_v18, %v2516_v37 }
 0x25f   :  { %v2184_v53 = vpack.c.bf16 %v741_v14, %v3063_v9 }
 0x260   :  { %v703_v30 = vpop.permute.xlu1 %702  ;;  %2155 = vmatpush1.bf16.msra.mxu0 %v2154_v10 }
 0x261   :  { %v706_v2 = vsel %vm148_vm3, %v703_v30, %v2511_v31  ;;  %2177 = vmatprep.subr.bf16.mxu0 %v2176_v47  ;;  %v707_v41 = vsel %vm148_vm3, %v2481_v19, %v703_v30  ;;  %v683_v31 = vsel %vm123_vm2, %v2476_v57, %v679_v50  ;;  %v736_v19 = vsel %vm179_vm4, %v2491_v11, %v735_v18  ;;  %v783_v40 = vpop.permute.xlu0 %782 }
 0x262   :  { %v2180_v44 = vpack.c.bf16 %v706_v2, %v682_v43  ;;  %v2182_v16 = vpack.c.bf16 %v707_v41, %v683_v31  ;;  %v2186_v34 = vpack.c.bf16 %v736_v19, %v3049_v45  ;;  %v789_v57 = vsel %vm229_vm5, %v783_v40, %v2526_v52 }
 0x263   :  { %1729 = vmatmul.mubr.msk.f32.vlgmr.msra.gmra.mrb[0].mxu0 %vm343_vm8, %v3098_v38  ;;  %v784_v24 = vsel %vm229_vm5, %v2501_v21, %v783_v40  ;;  %v2341_v21 = vtrunc.f32 %v45_v1  ;;  %v3339_v52 = vadd.s32 32, %v3021_v25 }
 0x264   :  { %v759_v60 = vpop.permute.xlu1 %758  ;;  %2179 = vmatpush1.bf16.msra.mxu0 %v2178_v36  ;;  %1093 = vmatprep.mubr.f32.mxu0 %v2617_v17 }
 0x265   :  { %2181 = vmatprep.subr.bf16.mxu0 %v2180_v44  ;;  %v765_v37 = vsel %vm204_vm6, %v759_v60, %v2521_v51  ;;  %v760_v28 = vsel %vm204_vm6, %v2496_v32, %v759_v60  ;;  %v3321_v42 = vcvt.f32.s32 %v2341_v21  ;;  %v3342_v51 = vadd.s32 40, %v3021_v25 }
 0x266   :  { %v2188_v11 = vpack.c.bf16 %v789_v57, %v765_v37  ;;  %v2190_v45 = vpack.c.bf16 %v784_v24, %v760_v28 }
 0x267   :  { %v3336_v46 = vadd.s32 4294967168, %v3321_v42  ;;  %v3513_v14 = vadd.s32 4294966912, %v3321_v42  ;;  %v3619_v1 = vadd.s32 4294966784, %v3321_v42 }
 0x268   :  { %2183 = vmatpush1.bf16.msra.mxu0 %v2182_v16  ;;  %v807_v0 = vpop.permute.xlu1 %806 }
 0x269   :  { %2185 = vmatprep.subr.bf16.mxu0 %v2184_v53  ;;  %v813_v9 = vsel %vm254_vm7, %v807_v0, %v2531_v29  ;;  %v808_v62 = vsel %vm254_vm7, %v2506_v4, %v807_v0  ;;  %v3324_v4 = vadd.s32 8, %v3021_v25  ;;  %vm1222_vm14 = vcmp.eq.s32.totalorder %v3021_v25, %v3336_v46 }
 0x26a   :  { %v2192_v33 = vpack.c.bf16 %v2533_v27, %v813_v9  ;;  %v2194_v32 = vpack.c.bf16 %v2705_v12, %v808_v62  ;;  %v3330_v12 = vadd.s32 24, %v3021_v25 }
 0x26b   :  { %vm1223_vm15 = vcmp.eq.s32.totalorder %v3324_v4, %v3336_v46 }
 0x26c   :  { %2187 = vmatpush1.bf16.msra.mxu0 %v2186_v34  ;;  %vm2197_vm3 = vmpackc.low %vm1223_vm15, %vm1222_vm14  ;;  %vm1224_vm14 = vcmp.eq.s32.totalorder %v3327_v26, %v3336_v46  ;;  %vm1225_vm15 = vcmp.eq.s32.totalorder %v3330_v12, %v3336_v46 }
 0x26d   :  { %2189 = vmatprep.subr.bf16.mxu0 %v2188_v11 }
 0x270   :  { %2191 = vmatpush1.bf16.msra.mxu0 %v2190_v45 }
 0x271   :  { %2193 = vmatprep.subr.bf16.mxu0 %v2192_v33  ;;  %v336_v48 = vpop.permute.xlu0 %335 }
 0x274   :  { %2195 = vmatpush1.bf16.msra.mxu0 %v2194_v32 }
 0x275   :  { %2196 = vmatprep.subr.bf16.mxu0 %v2620_v7 }
 0x277   :  { %1731 = vmatmul.mubr.msk.f32.vlgmr.msra.gmra.mrb[4].mxu0 %vm343_vm8, %v3098_v38  ;;  %v3333_v38 = vadd.s32 4294967040, %v3321_v42 }
 0x278   :  { %2198 = vmatpush3.bf16.msk.msra.mxu0 %vm2197_vm3, %v2621_v56 }
 0x279   :  { %vm1395_vm9 = vcmp.eq.s32.totalorder %v3021_v25, %v3333_v38  ;;  %vm1396_vm10 = vcmp.eq.s32.totalorder %v3324_v4, %v3333_v38  ;;  %vm1397_vm11 = vcmp.eq.s32.totalorder %v3327_v26, %v3333_v38  ;;  %vm1398_vm12 = vcmp.eq.s32.totalorder %v3330_v12, %v3333_v38  ;;  %2199 = vmatprep.subr.bf16.mxu0 %v2620_v7  ;;  %v883_v29 = vpop.permute.xlu1 %882 }
 0x27a   :  { %vm2245_vm13 = vmpackc.low %vm1396_vm10, %vm1395_vm9  ;;  %vm1399_vm1 = vcmp.eq.s32.totalorder %v3339_v52, %v3333_v38  ;;  %vm1400_vm2 = vcmp.eq.s32.totalorder %v3342_v51, %v3333_v38  ;;  %vm1401_vm8 = vcmp.eq.s32.totalorder %v3363_v35, %v3333_v38  ;;  %vm1402_vm9 = vcmp.eq.s32.totalorder %v3366_v58, %v3333_v38 }
 0x27b   :  { %2246 = vmatpush3.bf16.msk.msra.mxu1 %vm2245_vm13, %v2621_v56  ;;  %vm2248_vm0 = vmpackc.low %vm1398_vm12, %vm1397_vm11  ;;  %vm1403_vm11 = vcmp.eq.s32.totalorder %v3377_v61, %v3333_v38  ;;  %vm1404_vm12 = vcmp.eq.s32.totalorder %v3380_v20, %v3333_v38  ;;  %v2316_v50 = vadd.f32 %v883_v29, %v336_v48 }
 0x27c   :  { %2247 = vmatprep.subr.bf16.mxu1 %v2620_v7  ;;  %vm2251_vm6 = vmpackc.low %vm1400_vm2, %vm1399_vm1  ;;  %vm1405_vm1 = vcmp.eq.s32.totalorder %v3393_v15, %v3333_v38  ;;  %vm1406_vm2 = vcmp.eq.s32.totalorder %v3396_v3, %v3333_v38 }
 0x27d   :  { %vm2254_vm10 = vmpackc.low %vm1402_vm9, %vm1401_vm8  ;;  %vm1227_vm8 = vcmp.eq.s32.totalorder %v3342_v51, %v3336_v46 }
 0x27e   :  { %vm2257_vm13 = vmpackc.low %vm1404_vm12, %vm1403_vm11  ;;  %vm1408_vm11 = vcmp.eq.s32.totalorder %v3413_v39, %v3333_v38 }
 0x27f   :  { %2249 = vmatpush3.bf16.msk.msra.mxu1 %vm2248_vm0, %v2621_v56  ;;  %vm2200_vm0 = vmpackc.low %vm1225_vm15, %vm1224_vm14  ;;  %vm1229_vm14 = vcmp.eq.s32.totalorder %v3366_v58, %v3336_v46 }
 0x280   :  { %2250 = vmatprep.subr.bf16.mxu1 %v2620_v7  ;;  %2201 = vmatpush3.bf16.msk.msra.mxu0 %vm2200_vm0, %v2621_v56  ;;  %vm2260_vm3 = vmpackc.low %vm1406_vm2, %vm1405_vm1  ;;  %vm1409_vm0 = vcmp.eq.s32.totalorder %v3428_v6, %v3333_v38  ;;  %vm1410_vm1 = vcmp.eq.s32.totalorder %v3431_v13, %v3333_v38 }
 0x281   :  { %2202 = vmatprep.subr.bf16.mxu0 %v2620_v7  ;;  %vm2266_vm2 = vmpackc.low %vm1410_vm1, %vm1409_vm0  ;;  %vm1236_vm0 = vcmp.eq.s32.totalorder %v3428_v6, %v3336_v46  ;;  %vm1237_vm1 = vcmp.eq.s32.totalorder %v3431_v13, %v3336_v46 }
 0x283   :  { %2252 = vmatpush3.bf16.msk.msra.mxu1 %vm2251_vm6, %v2621_v56  ;;  %vm1226_vm6 = vcmp.eq.s32.totalorder %v3339_v52, %v3336_v46 }
 0x284   :  { %2253 = vmatprep.subr.bf16.mxu1 %v2620_v7  ;;  %vm2203_vm9 = vmpackc.low %vm1227_vm8, %vm1226_vm6  ;;  %vm1231_vm6 = vcmp.eq.s32.totalorder %v3380_v20, %v3336_v46  ;;  %vm2622_vm8 = vmmov 0  }
 0x285   :  { %2204 = vmatpush3.bf16.msk.msra.mxu0 %vm2203_vm9, %v2621_v56  ;;  %2003 = vmatprep.mubr.msk.f32.mxu1 %vm2622_vm8, %v2617_v17 }
 0x286   :  { %2205 = vmatprep.subr.bf16.mxu0 %v2620_v7  ;;  %1933 = vmatprep.mubr.msk.f32.mxu0 %vm2622_vm8, %v2617_v17 }
 0x287   :  { %2255 = vmatpush3.bf16.msk.msra.mxu1 %vm2254_vm10, %v2621_v56  ;;  %vm1407_vm10 = vcmp.eq.s32.totalorder %v3410_v63, %v3333_v38 }
 0x288   :  { %2256 = vmatprep.subr.bf16.mxu1 %v2620_v7  ;;  %vm2263_vm12 = vmpackc.low %vm1408_vm11, %vm1407_vm10  ;;  %vm1232_vm10 = vcmp.eq.s32.totalorder %v3393_v15, %v3336_v46  ;;  %vm1233_vm11 = vcmp.eq.s32.totalorder %v3396_v3, %v3336_v46 }
 0x28b   :  { %2258 = vmatpush3.bf16.msk.msra.mxu1 %vm2257_vm13, %v2621_v56  ;;  %vm1228_vm13 = vcmp.eq.s32.totalorder %v3363_v35, %v3336_v46 }
 0x28c   :  { %2259 = vmatprep.subr.bf16.mxu1 %v2620_v7  ;;  %vm2206_vm15 = vmpackc.low %vm1229_vm14, %vm1228_vm13  ;;  %vm1234_vm13 = vcmp.eq.s32.totalorder %v3410_v63, %v3336_v46  ;;  %vm1235_vm14 = vcmp.eq.s32.totalorder %v3413_v39, %v3336_v46 }
 0x28d   :  { %2207 = vmatpush3.bf16.msk.msra.mxu0 %vm2206_vm15, %v2621_v56  ;;  %vm2215_vm15 = vmpackc.low %vm1235_vm14, %vm1234_vm13  ;;  %vm1503_vm13 = vcmp.eq.s32.totalorder %v3339_v52, %v3513_v14  ;;  %vm1504_vm14 = vcmp.eq.s32.totalorder %v3342_v51, %v3513_v14 }
 0x28e   :  { %2208 = vmatprep.subr.bf16.mxu0 %v2620_v7 }
 0x28f   :  { %2261 = vmatpush3.bf16.msk.msra.mxu1 %vm2260_vm3, %v2621_v56  ;;  %vm1230_vm3 = vcmp.eq.s32.totalorder %v3377_v61, %v3336_v46 }
 0x290   :  { %2262 = vmatprep.subr.bf16.mxu1 %v2620_v7  ;;  %vm2209_vm9 = vmpackc.low %vm1231_vm6, %vm1230_vm3  ;;  %vm1499_vm3 = vcmp.eq.s32.totalorder %v3021_v25, %v3513_v14  ;;  %vm1500_vm6 = vcmp.eq.s32.totalorder %v3324_v4, %v3513_v14 }
 0x291   :  { %2210 = vmatpush3.bf16.msk.msra.mxu0 %vm2209_vm9, %v2621_v56  ;;  %vm2269_vm9 = vmpackc.low %vm1500_vm6, %vm1499_vm3  ;;  %vm1189_vm3 = vcmp.eq.s32.totalorder %v3021_v25, %v3321_v42  ;;  %vm1190_vm6 = vcmp.eq.s32.totalorder %v3324_v4, %v3321_v42 }
 0x292   :  { %2211 = vmatprep.subr.bf16.mxu0 %v2620_v7 }
 0x293   :  { %2264 = vmatpush3.bf16.msk.msra.mxu1 %vm2263_vm12, %v2621_v56  ;;  %vm2212_vm12 = vmpackc.low %vm1233_vm11, %vm1232_vm10  ;;  %vm1501_vm10 = vcmp.eq.s32.totalorder %v3327_v26, %v3513_v14  ;;  %vm1502_vm11 = vcmp.eq.s32.totalorder %v3330_v12, %v3513_v14 }
 0x294   :  { %2265 = vmatprep.subr.bf16.mxu1 %v2620_v7 }
 0x295   :  { %2213 = vmatpush3.bf16.msk.msra.mxu0 %vm2212_vm12, %v2621_v56  ;;  %vm2272_vm12 = vmpackc.low %vm1502_vm11, %vm1501_vm10  ;;  %vm1508_vm10 = vcmp.eq.s32.totalorder %v3380_v20, %v3513_v14 }
 0x296   :  { %2214 = vmatprep.subr.bf16.mxu0 %v2620_v7  ;;  %vm2221_vm11 = vmpackc.low %vm1190_vm6, %vm1189_vm3  ;;  %vm1193_vm3 = vcmp.eq.s32.totalorder %v3339_v52, %v3321_v42  ;;  %vm1194_vm6 = vcmp.eq.s32.totalorder %v3342_v51, %v3321_v42 }
 0x297   :  { %2267 = vmatpush3.bf16.msk.msra.mxu1 %vm2266_vm2, %v2621_v56  ;;  %vm2218_vm2 = vmpackc.low %vm1237_vm1, %vm1236_vm0  ;;  %vm1505_vm0 = vcmp.eq.s32.totalorder %v3363_v35, %v3513_v14  ;;  %vm1506_vm1 = vcmp.eq.s32.totalorder %v3366_v58, %v3513_v14 }
 0x298   :  { %2268 = vmatprep.subr.bf16.mxu1 %v2620_v7 }
 0x299   :  { %2216 = vmatpush3.bf16.msk.msra.mxu0 %vm2215_vm15, %v2621_v56  ;;  %vm2275_vm15 = vmpackc.low %vm1504_vm14, %vm1503_vm13  ;;  %vm1191_vm13 = vcmp.eq.s32.totalorder %v3327_v26, %v3321_v42  ;;  %vm1192_vm14 = vcmp.eq.s32.totalorder %v3330_v12, %v3321_v42 }
 0x29a   :  { %2217 = vmatprep.subr.bf16.mxu0 %v2620_v7 }
 0x29d   :  { %2219 = vmatpush3.bf16.msk.msra.mxu0 %vm2218_vm2, %v2621_v56  ;;  %vm2278_vm2 = vmpackc.low %vm1506_vm1, %vm1505_vm0  ;;  %vm1510_vm0 = vcmp.eq.s32.totalorder %v3396_v3, %v3513_v14 }
 0x29e   :  { %2220 = vmatprep.subr.bf16.mxu0 %v2620_v7  ;;  %vm2224_vm1 = vmpackc.low %vm1192_vm14, %vm1191_vm13  ;;  %vm1195_vm13 = vcmp.eq.s32.totalorder %v3363_v35, %v3321_v42  ;;  %vm1196_vm14 = vcmp.eq.s32.totalorder %v3366_v58, %v3321_v42 }
 0x326   :  { %v1024_v22 = vpop.f32.mrb[0].mxu1 }
 0x327   :  { %v2321_v55 = vadd.f32 %v2316_v50, %v1024_v22  ;;  %v1026_v54 = vpop.f32.mrb[1].mxu1 }
 0x328   :  { %v3452_v59 = vadd.f32 %v2316_v50, %v1026_v54 }
 0x329   :  { %1110 = vrot.lane.b32.xlu0 %v2321_v55, %s2614_s9 }
 0x32a   :  { %1112 = vrot.lane.b32.xlu1 %v3452_v59, %s2614_s9 }
 0x32d   :  { %1132 = vrot.lane.b32.xlu0 %v2321_v55, %s2615_s10 }
 0x32e   :  { %1134 = vrot.lane.b32.xlu1 %v3452_v59, %s2615_s10 }
 0x331   :  { %1154 = vrot.lane.b32.xlu0 %v2321_v55, %s2618_s12 }
 0x332   :  { %1156 = vrot.lane.b32.xlu1 %v3452_v59, %s2618_s12 }
 0x336   :  { %v953_v49 = vpop.f32.mrb[0].mxu0 }
 0x337   :  { %v955_v10 = vpop.f32.mrb[1].mxu0  ;;  %v3488_v8 = vadd.f32 %v2316_v50, %v953_v49 }
 0x338   :  { %v2319_v47 = vadd.f32 %v2316_v50, %v955_v10 }
 0x33a   :  { %1108 = vrot.lane.b32.xlu0 %v2319_v47, %s2614_s9 }
 0x33e   :  { %1130 = vrot.lane.b32.xlu0 %v2319_v47, %s2615_s10 }
 0x342   :  { %1152 = vrot.lane.b32.xlu0 %v2319_v47, %s2618_s12 }
 0x346   :  { %1106 = vrot.lane.b32.xlu0 %v3488_v8, %s2614_s9 }
 0x34a   :  { %v1095_v30 = vpop.f32.mrb[4].mxu0  ;;  %1128 = vrot.lane.b32.xlu0 %v3488_v8, %s2615_s10 }
 0x34b   :  { %v3494_v5 = vadd.f32 %v2316_v50, %v1095_v30  ;;  %v1097_v43 = vpop.f32.mrb[5].mxu0 }
 0x34c   :  { %v2327_v18 = vadd.f32 %v2316_v50, %v1097_v43 }
 0x34d   :  { %1114 = vrot.lane.b32.xlu1 %v3494_v5, %s2614_s9 }
 0x34e   :  { %1150 = vrot.lane.b32.xlu0 %v3488_v8, %s2618_s12 }
 0x351   :  { %1136 = vrot.lane.b32.xlu1 %v3494_v5, %s2615_s10 }
 0x355   :  { %1158 = vrot.lane.b32.xlu1 %v3494_v5, %s2618_s12 }
 0x359   :  { %1116 = vrot.lane.b32.xlu1 %v2327_v18, %s2614_s9 }
 0x35d   :  { %1138 = vrot.lane.b32.xlu1 %v2327_v18, %s2615_s10 }
 0x361   :  { %1160 = vrot.lane.b32.xlu1 %v2327_v18, %s2618_s12 }
 0x39b   :  { %v1111_v2 = vpop.permute.xlu0 %1110 }
 0x39c   :  { %v3507_v36 = vpop.permute.xlu1 %1112 }
 0x39d   :  { %v1120_v44 = vsel %vm179_vm4, %v1111_v2, %v3507_v36 }
 0x39e   :  { %v1125_v16 = vadd.f32 %v2321_v55, %v1120_v44 }
 0x39f   :  { %v1133_v41 = vpop.permute.xlu0 %1132 }
 0x3a0   :  { %v3515_v60 = vpop.permute.xlu1 %1134 }
 0x3a1   :  { %v1142_v31 = vsel %vm229_vm5, %v1133_v41, %v3515_v60 }
 0x3a2   :  { %v1147_v53 = vadd.f32 %v1142_v31, %v1125_v16 }
 0x3a3   :  { %v1155_v19 = vpop.permute.xlu0 %1154 }
 0x3a4   :  { %v3524_v40 = vpop.permute.xlu1 %1156 }
 0x3a5   :  { %v1164_v37 = vsel %vm254_vm7, %v1155_v19, %v3524_v40 }
 0x3a6   :  { %v1169_v0 = vadd.f32 %v1164_v37, %v1147_v53 }
 0x3a8   :  { %2004 = vmatmul.mubr.f32.vlgmr.msra.gmra.mrb[4].mxu1 %v1169_v0 }
 0x3a9   :  { %2270 = vmatpush3.bf16.msk.msra.mxu1 %vm2269_vm9, %v2621_v56  ;;  %2038 = vmatprep.mubr.msk.f32.mxu1 %vm2622_vm8, %v2617_v17  ;;  %vm1507_vm9 = vcmp.eq.s32.totalorder %v3377_v61, %v3513_v14 }
 0x3aa   :  { %2271 = vmatprep.subr.bf16.mxu1 %v2620_v7 }
 0x3ac   :  { %v3541_v34 = vpop.permute.xlu0 %1108 }
 0x3ad   :  { %2273 = vmatpush3.bf16.msk.msra.mxu1 %vm2272_vm12, %v2621_v56  ;;  %v1121_v57 = vsel %vm179_vm4, %v3541_v34, %v1111_v2  ;;  %vm2281_vm12 = vmpackc.low %vm1508_vm10, %vm1507_vm9  ;;  %vm1511_vm9 = vcmp.eq.s32.totalorder %v3410_v63, %v3513_v14  ;;  %vm1512_vm10 = vcmp.eq.s32.totalorder %v3413_v39, %v3513_v14 }
 0x3ae   :  { %2274 = vmatprep.subr.bf16.mxu1 %v2620_v7  ;;  %v1124_v9 = vadd.f32 %v2319_v47, %v1121_v57 }
 0x3b0   :  { %v3552_v28 = vpop.permute.xlu0 %1130 }
 0x3b1   :  { %v1143_v11 = vsel %vm229_vm5, %v3552_v28, %v1133_v41  ;;  %2276 = vmatpush3.bf16.msk.msra.mxu1 %vm2275_vm15, %v2621_v56  ;;  %vm1509_vm15 = vcmp.eq.s32.totalorder %v3393_v15, %v3513_v14 }
 0x3b2   :  { %2277 = vmatprep.subr.bf16.mxu1 %v2620_v7  ;;  %v1146_v24 = vadd.f32 %v1143_v11, %v1124_v9 }
 0x3b4   :  { %v3567_v45 = vpop.permute.xlu0 %1152 }
 0x3b5   :  { %v1165_v62 = vsel %vm254_vm7, %v3567_v45, %v1155_v19  ;;  %2279 = vmatpush3.bf16.msk.msra.mxu1 %vm2278_vm2, %v2621_v56  ;;  %vm2284_vm2 = vmpackc.low %vm1510_vm0, %vm1509_vm15  ;;  %vm1513_vm15 = vcmp.eq.s32.totalorder %v3428_v6, %v3513_v14  ;;  %vm1514_vm0 = vcmp.eq.s32.totalorder %v3431_v13, %v3513_v14 }
 0x3b6   :  { %v1168_v27 = vadd.f32 %v1165_v62, %v1146_v24  ;;  %2280 = vmatprep.subr.bf16.mxu1 %v2620_v7 }
 0x3b8   :  { %1934 = vmatmul.mubr.f32.vlgmr.msra.gmra.mrb[8].mxu0 %v1168_v27  ;;  %v1107_v38 = vpop.permute.xlu0 %1106 }
 0x3b9   :  { %2222 = vmatpush3.bf16.msk.msra.mxu0 %vm2221_vm11, %v2621_v56  ;;  %2282 = vmatpush3.bf16.msk.msra.mxu1 %vm2281_vm12, %v2621_v56  ;;  %vm2227_vm11 = vmpackc.low %vm1194_vm6, %vm1193_vm3  ;;  %vm1197_vm3 = vcmp.eq.s32.totalorder %v3377_v61, %v3321_v42  ;;  %vm1198_vm6 = vcmp.eq.s32.totalorder %v3380_v20, %v3321_v42 }
 0x3ba   :  { %2223 = vmatprep.subr.bf16.mxu0 %v2620_v7  ;;  %2283 = vmatprep.subr.bf16.mxu1 %v2620_v7  ;;  %vm2287_vm12 = vmpackc.low %vm1512_vm10, %vm1511_vm9  ;;  %vm1603_vm10 = vcmp.eq.s32.totalorder %v3021_v25, %v3619_v1 }
 0x3bb   :  { %1968 = vmatprep.mubr.msk.f32.mxu0 %vm2622_vm8, %v2617_v17  ;;  %vm2233_vm9 = vmpackc.low %vm1198_vm6, %vm1197_vm3  ;;  %vm1202_vm3 = vcmp.eq.s32.totalorder %v3413_v39, %v3321_v42 }
 0x3bc   :  { %v1129_v25 = vpop.permute.xlu0 %1128 }
 0x3bd   :  { %2225 = vmatpush3.bf16.msk.msra.mxu0 %vm2224_vm1, %v2621_v56  ;;  %2285 = vmatpush3.bf16.msk.msra.mxu1 %vm2284_vm2, %v2621_v56  ;;  %vm2230_vm1 = vmpackc.low %vm1196_vm14, %vm1195_vm13  ;;  %vm1200_vm13 = vcmp.eq.s32.totalorder %v3396_v3, %v3321_v42 }
 0x3be   :  { %2226 = vmatprep.subr.bf16.mxu0 %v2620_v7  ;;  %2286 = vmatprep.subr.bf16.mxu1 %v2620_v7  ;;  %vm2290_vm2 = vmpackc.low %vm1514_vm0, %vm1513_vm15  ;;  %vm1605_vm0 = vcmp.eq.s32.totalorder %v3327_v26, %v3619_v1  ;;  %v1144_v26 = vsel %vm229_vm5, %v1129_v25, %v3552_v28 }
 0x3bf   :  { %v3604_v33 = vpop.permute.xlu1 %1114 }
 0x3c0   :  { %v1119_v32 = vsel %vm179_vm4, %v3507_v36, %v3604_v33 }
 0x3c1   :  { %2228 = vmatpush3.bf16.msk.msra.mxu0 %vm2227_vm11, %v2621_v56  ;;  %2288 = vmatpush3.bf16.msk.msra.mxu1 %vm2287_vm12, %v2621_v56  ;;  %v1126_v29 = vadd.f32 %v3452_v59, %v1119_v32  ;;  %vm1604_vm11 = vcmp.eq.s32.totalorder %v3324_v4, %v3619_v1  ;;  %vm1199_vm12 = vcmp.eq.s32.totalorder %v3393_v15, %v3321_v42 }
 0x3c2   :  { %2229 = vmatprep.subr.bf16.mxu0 %v2620_v7  ;;  %2289 = vmatprep.subr.bf16.mxu1 %v2620_v7  ;;  %vm2293_vm14 = vmpackc.low %vm1604_vm11, %vm1603_vm10  ;;  %vm1607_vm10 = vcmp.eq.s32.totalorder %v3339_v52, %v3619_v1  ;;  %vm1608_vm11 = vcmp.eq.s32.totalorder %v3342_v51, %v3619_v1  ;;  %v1122_v4 = vsel %vm179_vm4, %v1107_v38, %v3541_v34 }
 0x3c3   :  { %v3621_v21 = vpop.permute.xlu1 %1136  ;;  %vm2236_vm15 = vmpackc.low %vm1200_vm13, %vm1199_vm12  ;;  %vm1204_vm12 = vcmp.eq.s32.totalorder %v3431_v13, %v3321_v42 }
 0x3c4   :  { %v1141_v46 = vsel %vm229_vm5, %v3515_v60, %v3621_v21  ;;  %vm2299_vm13 = vmpackc.low %vm1608_vm11, %vm1607_vm10  ;;  %vm1614_vm10 = vcmp.eq.s32.totalorder %v3396_v3, %v3619_v1 }
 0x3c5   :  { %2231 = vmatpush3.bf16.msk.msra.mxu0 %vm2230_vm1, %v2621_v56  ;;  %2291 = vmatpush3.bf16.msk.msra.mxu1 %vm2290_vm2, %v2621_v56  ;;  %v1148_v48 = vadd.f32 %v1141_v46, %v1126_v29  ;;  %vm1606_vm1 = vcmp.eq.s32.totalorder %v3330_v12, %v3619_v1  ;;  %vm1201_vm2 = vcmp.eq.s32.totalorder %v3410_v63, %v3321_v42 }
 0x3c6   :  { %2232 = vmatprep.subr.bf16.mxu0 %v2620_v7  ;;  %2292 = vmatprep.subr.bf16.mxu1 %v2620_v7  ;;  %vm2296_vm6 = vmpackc.low %vm1606_vm1, %vm1605_vm0  ;;  %v1123_v12 = vadd.f32 %v3488_v8, %v1122_v4  ;;  %vm1610_vm0 = vcmp.eq.s32.totalorder %v3366_v58, %v3619_v1 }
 0x3c7   :  { %v3640_v50 = vpop.permute.xlu1 %1158 }
 0x3c8   :  { %v1163_v22 = vsel %vm254_vm7, %v3524_v40, %v3640_v50  ;;  %v1145_v52 = vadd.f32 %v1144_v26, %v1123_v12 }
 0x3c9   :  { %v1170_v55 = vadd.f32 %v1163_v22, %v1148_v48  ;;  %2234 = vmatpush3.bf16.msk.msra.mxu0 %vm2233_vm9, %v2621_v56  ;;  %vm2239_vm9 = vmpackc.low %vm1202_vm3, %vm1201_vm2  ;;  %vm1611_vm2 = vcmp.eq.s32.totalorder %v3377_v61, %v3619_v1  ;;  %vm1612_vm3 = vcmp.eq.s32.totalorder %v3380_v20, %v3619_v1 }
 0x3ca   :  { %2235 = vmatprep.subr.bf16.mxu0 %v2620_v7 }
 0x3cb   :  { %2039 = vmatmul.mubr.f32.vlgmr.msra.gmra.mrb[4].mxu1 %v1170_v55 }
 0x3cc   :  { %2294 = vmatpush3.bf16.msk.msra.mxu1 %vm2293_vm14, %v2621_v56  ;;  %2073 = vmatprep.mubr.msk.f32.mxu1 %vm2622_vm8, %v2617_v17  ;;  %vm1203_vm8 = vcmp.eq.s32.totalorder %v3428_v6, %v3321_v42  ;;  %v1151_v17 = vpop.permute.xlu0 %1150 }
 0x3cd   :  { %2237 = vmatpush3.bf16.msk.msra.mxu0 %vm2236_vm15, %v2621_v56  ;;  %2295 = vmatprep.subr.bf16.mxu1 %v2620_v7  ;;  %vm2242_vm14 = vmpackc.low %vm1204_vm12, %vm1203_vm8  ;;  %vm1609_vm15 = vcmp.eq.s32.totalorder %v3363_v35, %v3619_v1  ;;  %v1166_v42 = vsel %vm254_vm7, %v1151_v17, %v3567_v45  ;;  %v1117_v35 = vpop.permute.xlu1 %1116  ;;  %vm1615_vm8 = vcmp.eq.s32.totalorder %v3410_v63, %v3619_v1 }
 0x3ce   :  { %2238 = vmatprep.subr.bf16.mxu0 %v2620_v7  ;;  %vm2302_vm1 = vmpackc.low %vm1610_vm0, %vm1609_vm15  ;;  %v1167_v51 = vadd.f32 %v1166_v42, %v1145_v52  ;;  %vm1616_vm12 = vcmp.eq.s32.totalorder %v3413_v39, %v3619_v1  ;;  %v1118_v61 = vsel %vm179_vm4, %v3604_v33, %v1117_v35  ;;  %vm1618_vm15 = vcmp.eq.s32.totalorder %v3431_v13, %v3619_v1 }
 0x3cf   :  { %v1127_v3 = vadd.f32 %v3494_v5, %v1118_v61 }
 0x3d0   :  { %2297 = vmatpush3.bf16.msk.msra.mxu1 %vm2296_vm6, %v2621_v56  ;;  %vm2305_vm6 = vmpackc.low %vm1612_vm3, %vm1611_vm2 }
 0x3d1   :  { %2240 = vmatpush3.bf16.msk.msra.mxu0 %vm2239_vm9, %v2621_v56  ;;  %2298 = vmatprep.subr.bf16.mxu1 %v2620_v7  ;;  %vm1613_vm9 = vcmp.eq.s32.totalorder %v3393_v15, %v3619_v1  ;;  %v1139_v58 = vpop.permute.xlu1 %1138 }
 0x3d2   :  { %2241 = vmatprep.subr.bf16.mxu0 %v2620_v7  ;;  %vm2308_vm11 = vmpackc.low %vm1614_vm10, %vm1613_vm9  ;;  %v1140_v15 = vsel %vm229_vm5, %v3621_v21, %v1139_v58 }
 0x3d3   :  { %v1149_v39 = vadd.f32 %v1140_v15, %v1127_v3 }
 0x3d4   :  { %2300 = vmatpush3.bf16.msk.msra.mxu1 %vm2299_vm13, %v2621_v56  ;;  %vm2311_vm13 = vmpackc.low %vm1616_vm12, %vm1615_vm8 }
 0x3d5   :  { %2243 = vmatpush3.bf16.msk.msra.mxu0 %vm2242_vm14, %v2621_v56  ;;  %2301 = vmatprep.subr.bf16.mxu1 %v2620_v7  ;;  %vm1617_vm14 = vcmp.eq.s32.totalorder %v3428_v6, %v3619_v1  ;;  %v1161_v20 = vpop.permute.xlu1 %1160 }
 0x3d6   :  { %vm2314_vm0 = vmpackc.low %vm1618_vm15, %vm1617_vm14  ;;  %v1162_v63 = vsel %vm254_vm7, %v3640_v50, %v1161_v20 }
 0x3d7   :  { %v1171_v6 = vadd.f32 %v1162_v63, %v1149_v39 }
 0x3d8   :  { %1969 = vmatmul.mubr.f32.vlgmr.msra.gmra.mrb[8].mxu0 %v1167_v51  ;;  %2303 = vmatpush3.bf16.msk.msra.mxu1 %vm2302_vm1, %v2621_v56 }
 0x3d9   :  { %2304 = vmatprep.subr.bf16.mxu1 %v2620_v7 }
 0x3dc   :  { %2306 = vmatpush3.bf16.msk.msra.mxu1 %vm2305_vm6, %v2621_v56 }
 0x3dd   :  { %2307 = vmatprep.subr.bf16.mxu1 %v2620_v7 }
 0x3e0   :  { %2309 = vmatpush3.bf16.msk.msra.mxu1 %vm2308_vm11, %v2621_v56 }
 0x3e1   :  { %2310 = vmatprep.subr.bf16.mxu1 %v2620_v7 }
 0x3e4   :  { %2312 = vmatpush3.bf16.msk.msra.mxu1 %vm2311_vm13, %v2621_v56 }
 0x3e5   :  { %2313 = vmatprep.subr.bf16.mxu1 %v2620_v7 }
 0x3e8   :  { %2315 = vmatpush3.bf16.msk.msra.mxu1 %vm2314_vm0, %v2621_v56 }
 0x3eb   :  { %2074 = vmatmul.mubr.f32.vlgmr.msra.gmra.mrb[4].mxu1 %v1171_v6 }
 0x4ab   :  { %v1390_v13 = vpop.f32.mrb[8].mxu0 }
 0x4ac   :  { %v1970_v54 = vpop.f32.mrb[9].mxu0 }
 0x4be   :  { %v1701_v59 = vpop.f32.mrb[4].mxu1 }
 0x4bf   :  { %v2328_v49 = vadd.f32 %v1701_v59, %v1390_v13  ;;  %v2075_v10 = vpop.f32.mrb[5].mxu1 }
 0x4c1   :  { %1706 = vst [vmem:[#allocation8] sm:$0xff] %v2328_v49 }
 0x4c2   :  { %2589 = shalt.err (!%p2586_p6)
}
 0x4c3   :  { %s2590_s18 = scalar_lea.hbm %s3744_s2, 128 }
 0x4c4   :  { %p2591_p7 = scmp.ne.s32.totalorder %s3744_s2, %s2590_s18  ;;  %p2594_p8 = scmp.lt.u32.totalorder %s2590_s18, %s3744_s2 }
 0x4c6   :  { %p2596_p9 = pnand %p2594_p8, %p2591_p7 }
 0x4c8   :  { %2599 = shalt.err (!%p2596_p9)
}
 0x4c9   :  { %1716 = dma.vmem_to_hbm [thread:$0]  %s1714_s14, 128, %s3744_s2, [#allocation5]  }
 0x4ca   :  { %2604 = dma.done.wait [#allocation5], 128  }
 0x4cb   :  { %2605 = vsyncadd [#allocation5], 4294967168 }
 0x4cc   :  { %1720 = vsyncpa [#allocation4], 1 }
 0x4cd   :  { %1721 = vsyncpa [#allocation7], 1 }
 0x4ce   :  { %1722 = vsyncpa [#allocation5], 1 }

</bundles_post_ra>
